<compile_context>
chip_gen: v5e
topology: v5e:2x2
jax: 0.10.0
libtpu: 0.0.40
codegen_flags: <defaults>
</compile_context>

<pallas_src>
import jax
import jax.numpy as jnp
from jax.experimental import pallas as pl
from jax.experimental.pallas import tpu as pltpu


def _round_up(x, m):
    return (x + m - 1) // m * m


# ----------------------------- fused MaLSTM kernel -----------------------------
def _make_malstm_kernel(T, N, B, Hp):
    """T timesteps, N = padded stacked batch (2B rounded up to 8), Hp = padded H."""

    def kernel(x_ref, wih_ref, whh_ref, b_ref, wcls_ref, bcls_ref, o_ref, xp_ref):
        # ---- Hoisted input projection: one (T*N, E) @ (E, 4Hp) MXU matmul ----
        # Bias folded in here so the time loop is h@W_hh + elementwise only.
        xp_ref[...] = (
            jnp.dot(x_ref[...], wih_ref[...], preferred_element_type=jnp.float32)
            + b_ref[...]
        )

        whh = whh_ref[...]  # (Hp, 4Hp) bf16, resident for the whole recurrence

        # ---- Serial recurrence: unrolled in-kernel loop, carries in vregs ----
        def step(t, carry):
            h, c = carry
            g_x = xp_ref[pl.ds(t * N, N), :]                      # (N, 4Hp) f32
            gates = g_x + jnp.dot(
                h.astype(jnp.bfloat16), whh, preferred_element_type=jnp.float32
            )
            # Gate slices are 128-lane (vreg) aligned thanks to per-gate padding.
            i_g = jax.nn.sigmoid(gates[:, 0 * Hp:1 * Hp])
            f_g = jax.nn.sigmoid(gates[:, 1 * Hp:2 * Hp])
            g_g = jnp.tanh(gates[:, 2 * Hp:3 * Hp])
            o_g = jax.nn.sigmoid(gates[:, 3 * Hp:4 * Hp])
            c_new = f_g * c + i_g * g_g
            h_new = o_g * jnp.tanh(c_new)
            return h_new, c_new

        h0 = jnp.zeros((N, Hp), jnp.float32)
        c0 = jnp.zeros((N, Hp), jnp.float32)
        h_last, _ = jax.lax.fori_loop(0, T, step, (h0, c0), unroll=True)

        # ---- Fused classifier epilogue: features = [h_q1 | h_q2] @ W + b ----
        feats = jnp.concatenate(
            [h_last[0:B, :], h_last[B:2 * B, :]], axis=-1
        )  # (B, 2Hp), padded lanes are exactly zero
        o_ref[...] = (
            jnp.dot(feats, wcls_ref[...], preferred_element_type=jnp.float32)
            + bcls_ref[...]
        )

    return kernel


# ----------------------------- full MaLSTM forward -----------------------------
def malstm_forward(params, q1_ids, q2_ids):
    emb = params["embedding"]                     # (V, E), pad row zeroed
    w_ih, w_hh, b_lstm = params["w_ih"], params["w_hh"], params["b_lstm"]
    w_cls, b_cls = params["w_cls"], params["b_cls"]

    B, T = q1_ids.shape
    E = emb.shape[1]
    H = w_hh.shape[0]
    C = w_cls.shape[1]
    Hp = _round_up(H, 128)                        # lane-dense gate slots
    N = _round_up(2 * B, 8)                       # sublane-dense stacked batch

    # Embedding lookup (glue, plain JAX gather).
    e1 = jnp.take(emb, q1_ids, axis=0)            # (B, T, E)
    e2 = jnp.take(emb, q2_ids, axis=0)            # (B, T, E)

    # Stack both sequences into one batch [q1; q2], pad to N rows, go time-major
    # and flatten so row t*N + n is (timestep t, batch row n).
    x = jnp.concatenate([e1, e2], axis=0)                  # (2B, T, E)
    x = jnp.pad(x, ((0, N - 2 * B), (0, 0), (0, 0)))       # (N, T, E)
    x = jnp.transpose(x, (1, 0, 2)).reshape(T * N, E)      # (T*N, E)
    x = x.astype(jnp.bfloat16)                             # MXU operand

    # Pad each gate's H columns into a 128-lane slot; zero-pad W_hh rows so the
    # zero-valued padded lanes of h never pollute the gates.
    wih_p = jnp.pad(w_ih.reshape(E, 4, H), ((0, 0), (0, 0), (0, Hp - H)))
    wih_p = wih_p.reshape(E, 4 * Hp).astype(jnp.bfloat16)
    whh_p = jnp.pad(w_hh.reshape(H, 4, H), ((0, Hp - H), (0, 0), (0, Hp - H)))
    whh_p = whh_p.reshape(Hp, 4 * Hp).astype(jnp.bfloat16)
    b_p = jnp.pad(b_lstm.reshape(1, 4, H), ((0, 0), (0, 0), (0, Hp - H)))
    b_p = b_p.reshape(1, 4 * Hp).astype(jnp.float32)
    wcls_p = jnp.pad(w_cls.reshape(2, H, C), ((0, 0), (0, Hp - H), (0, 0)))
    wcls_p = wcls_p.reshape(2 * Hp, C).astype(jnp.float32)
    bcls_p = b_cls.reshape(1, C).astype(jnp.float32)

    kernel = _make_malstm_kernel(T=T, N=N, B=B, Hp=Hp)

    score = pl.pallas_call(
        kernel,
        out_shape=jax.ShapeDtypeStruct((B, C), jnp.float32),
        grid_spec=pltpu.PrefetchScalarGridSpec(
            num_scalar_prefetch=0,
            grid=(1,),
            in_specs=[
                pl.BlockSpec((T * N, E), lambda i: (0, 0)),      # x (bf16)
                pl.BlockSpec((E, 4 * Hp), lambda i: (0, 0)),     # W_ih (bf16)
                pl.BlockSpec((Hp, 4 * Hp), lambda i: (0, 0)),    # W_hh (bf16)
                pl.BlockSpec((1, 4 * Hp), lambda i: (0, 0)),     # LSTM bias (f32)
                pl.BlockSpec((2 * Hp, C), lambda i: (0, 0)),     # W_cls (f32)
                pl.BlockSpec((1, C), lambda i: (0, 0)),          # b_cls (f32)
            ],
            out_specs=pl.BlockSpec((B, C), lambda i: (0, 0)),    # score
            scratch_shapes=[
                pltpu.VMEM((T * N, 4 * Hp), jnp.float32),        # hoisted x@W_ih
            ],
        ),
        compiler_params=pltpu.CompilerParams(
            dimension_semantics=("arbitrary",),
        ),
    )(x, wih_p, whh_p, b_p, wcls_p, bcls_p)
    return score


def init_params(key, vocab_size, embedding_dim, hidden_size, pad_idx):
    k = jax.random.split(key, 6)
    emb = 0.1 * jax.random.normal(k[0], (vocab_size, embedding_dim), jnp.float32)
    emb = emb.at[pad_idx].set(0.0)
    w_ih = 0.1 * jax.random.normal(k[1], (embedding_dim, 4 * hidden_size), jnp.float32)
    w_hh = 0.1 * jax.random.normal(k[2], (hidden_size, 4 * hidden_size), jnp.float32)
    b_lstm = 0.05 * jax.random.normal(k[3], (1, 4 * hidden_size), jnp.float32)
    w_cls = 0.1 * jax.random.normal(k[4], (2 * hidden_size, 2), jnp.float32)
    b_cls = 0.05 * jax.random.normal(k[5], (2,), jnp.float32)
    return dict(embedding=emb, w_ih=w_ih, w_hh=w_hh, b_lstm=b_lstm,
                w_cls=w_cls, b_cls=b_cls)


if __name__ == "__main__":
    B, T = 2, 8
    V, E, H = 50, 32, 32
    PAD = 0

    key = jax.random.PRNGKey(0)
    kp, k1, k2 = jax.random.split(key, 3)
    params = init_params(kp, V, E, H, PAD)

    q1 = jax.random.randint(k1, (B, T), 1, V, dtype=jnp.int32)
    q2 = jax.random.randint(k2, (B, T), 1, V, dtype=jnp.int32)

    score = jax.jit(malstm_forward)(params, q1, q2)
    score = jax.block_until_ready(score)
    assert score.shape == (B, 2) and score.dtype == jnp.float32
    print("KERNEL_OK")
</pallas_src>

<mosaic_0001>
module attributes {stable_mosaic.version = 11 : i64} {
  func.func @kernel(%arg0: i32, %arg1: memref<64x32xbf16, #tpu.memory_space<vmem>>, %arg2: memref<32x512xbf16, #tpu.memory_space<vmem>>, %arg3: memref<128x512xbf16, #tpu.memory_space<vmem>>, %arg4: memref<1x512xf32, #tpu.memory_space<vmem>>, %arg5: memref<256x2xf32, #tpu.memory_space<vmem>>, %arg6: memref<1x2xf32, #tpu.memory_space<vmem>>, %arg7: memref<2x2xf32, #tpu.memory_space<vmem>>, %arg8: memref<64x512xf32, #tpu.memory_space<vmem>>) attributes {dimension_semantics = [#tpu.dimension_semantics<arbitrary>], iteration_bounds = array<i64: 1>, scalar_prefetch = 0 : i64, scratch_operands = 1 : i64, tpu.core_type = #tpu.core_type<tc>, window_params = [{pipeline_mode = #tpu.pipeline_mode<synchronous>, transform_indices = @transform_0, window_bounds = array<i64: 64, 32>}, {pipeline_mode = #tpu.pipeline_mode<synchronous>, transform_indices = @transform_1, window_bounds = array<i64: 32, 512>}, {pipeline_mode = #tpu.pipeline_mode<synchronous>, transform_indices = @transform_2, window_bounds = array<i64: 128, 512>}, {pipeline_mode = #tpu.pipeline_mode<synchronous>, transform_indices = @transform_3, window_bounds = array<i64: 1, 512>}, {pipeline_mode = #tpu.pipeline_mode<synchronous>, transform_indices = @transform_4, window_bounds = array<i64: 256, 2>}, {pipeline_mode = #tpu.pipeline_mode<synchronous>, transform_indices = @transform_5, window_bounds = array<i64: 1, 2>}, {pipeline_mode = #tpu.pipeline_mode<synchronous>, transform_indices = @transform_6, window_bounds = array<i64: 2, 2>}]} {
    %c0 = arith.constant 0 : index
    %c0_0 = arith.constant 0 : index
    %0 = vector.load %arg1[%c0, %c0_0] : memref<64x32xbf16, #tpu.memory_space<vmem>>, vector<64x32xbf16>
    %c0_1 = arith.constant 0 : index
    %c0_2 = arith.constant 0 : index
    %1 = vector.load %arg2[%c0_1, %c0_2] : memref<32x512xbf16, #tpu.memory_space<vmem>>, vector<32x512xbf16>
    %cst = arith.constant dense<0.000000e+00> : vector<64x512xf32>
    %2 = tpu.matmul %0, %1, %cst {dimension_numbers = #tpu.dot_dimension_numbers<[1], [0], [0], [1], [0, 0, 1, 1], [], []>} : vector<64x32xbf16>, vector<32x512xbf16>, vector<64x512xf32> -> vector<64x512xf32>
    %c0_3 = arith.constant 0 : index
    %c0_4 = arith.constant 0 : index
    %3 = vector.load %arg4[%c0_3, %c0_4] : memref<1x512xf32, #tpu.memory_space<vmem>>, vector<1x512xf32>
    %4 = vector.broadcast %3 : vector<1x512xf32> to vector<64x512xf32>
    %5 = arith.addf %2, %4 : vector<64x512xf32>
    %c0_5 = arith.constant 0 : index
    %c0_6 = arith.constant 0 : index
    %6 = vector.load %arg8[%c0_5, %c0_6] : memref<64x512xf32, #tpu.memory_space<vmem>>, vector<64x512xf32>
    tpu.vector_store %arg8[%c0_5, %c0_6], %5 {strides = array<i32>} : memref<64x512xf32, #tpu.memory_space<vmem>>, vector<64x512xf32>,
    %c0_7 = arith.constant 0 : index
    %c0_8 = arith.constant 0 : index
    %7 = vector.load %arg3[%c0_7, %c0_8] : memref<128x512xbf16, #tpu.memory_space<vmem>>, vector<128x512xbf16>
    %cst_9 = arith.constant 0.000000e+00 : f32
    %8 = vector.broadcast %cst_9 : f32 to vector<8x128xf32>
    %cst_10 = arith.constant 0.000000e+00 : f32
    %9 = vector.broadcast %cst_10 : f32 to vector<8x128xf32>
    %c0_i32 = arith.constant 0 : i32
    %c8_i32 = arith.constant 8 : i32
    %10 = arith.muli %c0_i32, %c8_i32 : i32
    %11 = arith.index_cast %10 : i32 to index
    %c0_11 = arith.constant 0 : index
    %12 = vector.load %arg8[%11, %c0_11] : memref<64x512xf32, #tpu.memory_space<vmem>>, vector<8x512xf32>
    %13 = arith.truncf %8 : vector<8x128xf32> to vector<8x128xbf16>
    %cst_12 = arith.constant dense<0.000000e+00> : vector<8x512xf32>
    %14 = tpu.matmul %13, %7, %cst_12 {dimension_numbers = #tpu.dot_dimension_numbers<[1], [0], [0], [1], [0, 0, 1, 1], [], []>} : vector<8x128xbf16>, vector<128x512xbf16>, vector<8x512xf32> -> vector<8x512xf32>
    %15 = arith.addf %12, %14 : vector<8x512xf32>
    %16 = vector.extract_strided_slice %15 {offsets = [0, 0], sizes = [8, 128], strides = [1, 1]} : vector<8x512xf32> to vector<8x128xf32>
    %17 = arith.negf %16 : vector<8x128xf32>
    %18 = math.exp %17 : vector<8x128xf32>
    %cst_13 = arith.constant 1.000000e+00 : f32
    %19 = vector.broadcast %cst_13 : f32 to vector<8x128xf32>
    %20 = arith.addf %19, %18 : vector<8x128xf32>
    %21 = arith.divf %19, %20 : vector<8x128xf32>
    %22 = vector.extract_strided_slice %15 {offsets = [0, 128], sizes = [8, 128], strides = [1, 1]} : vector<8x512xf32> to vector<8x128xf32>
    %23 = arith.negf %22 : vector<8x128xf32>
    %24 = math.exp %23 : vector<8x128xf32>
    %cst_14 = arith.constant 1.000000e+00 : f32
    %25 = vector.broadcast %cst_14 : f32 to vector<8x128xf32>
    %26 = arith.addf %25, %24 : vector<8x128xf32>
    %27 = arith.divf %25, %26 : vector<8x128xf32>
    %28 = vector.extract_strided_slice %15 {offsets = [0, 256], sizes = [8, 128], strides = [1, 1]} : vector<8x512xf32> to vector<8x128xf32>
    %29 = math.tanh %28 : vector<8x128xf32>
    %30 = vector.extract_strided_slice %15 {offsets = [0, 384], sizes = [8, 128], strides = [1, 1]} : vector<8x512xf32> to vector<8x128xf32>
    %31 = arith.negf %30 : vector<8x128xf32>
    %32 = math.exp %31 : vector<8x128xf32>
    %cst_15 = arith.constant 1.000000e+00 : f32
    %33 = vector.broadcast %cst_15 : f32 to vector<8x128xf32>
    %34 = arith.addf %33, %32 : vector<8x128xf32>
    %35 = arith.divf %33, %34 : vector<8x128xf32>
    %36 = arith.mulf %27, %9 : vector<8x128xf32>
    %37 = arith.mulf %21, %29 : vector<8x128xf32>
    %38 = arith.addf %36, %37 : vector<8x128xf32>
    %39 = math.tanh %38 : vector<8x128xf32>
    %40 = arith.mulf %35, %39 : vector<8x128xf32>
    %c1_i32 = arith.constant 1 : i32
    %c8_i32_16 = arith.constant 8 : i32
    %41 = arith.muli %c1_i32, %c8_i32_16 : i32
    %42 = arith.index_cast %41 : i32 to index
    %c0_17 = arith.constant 0 : index
    %43 = vector.load %arg8[%42, %c0_17] : memref<64x512xf32, #tpu.memory_space<vmem>>, vector<8x512xf32>
    %44 = arith.truncf %40 : vector<8x128xf32> to vector<8x128xbf16>
    %cst_18 = arith.constant dense<0.000000e+00> : vector<8x512xf32>
    %45 = tpu.matmul %44, %7, %cst_18 {dimension_numbers = #tpu.dot_dimension_numbers<[1], [0], [0], [1], [0, 0, 1, 1], [], []>} : vector<8x128xbf16>, vector<128x512xbf16>, vector<8x512xf32> -> vector<8x512xf32>
    %46 = arith.addf %43, %45 : vector<8x512xf32>
    %47 = vector.extract_strided_slice %46 {offsets = [0, 0], sizes = [8, 128], strides = [1, 1]} : vector<8x512xf32> to vector<8x128xf32>
    %48 = arith.negf %47 : vector<8x128xf32>
    %49 = math.exp %48 : vector<8x128xf32>
    %cst_19 = arith.constant 1.000000e+00 : f32
    %50 = vector.broadcast %cst_19 : f32 to vector<8x128xf32>
    %51 = arith.addf %50, %49 : vector<8x128xf32>
    %52 = arith.divf %50, %51 : vector<8x128xf32>
    %53 = vector.extract_strided_slice %46 {offsets = [0, 128], sizes = [8, 128], strides = [1, 1]} : vector<8x512xf32> to vector<8x128xf32>
    %54 = arith.negf %53 : vector<8x128xf32>
    %55 = math.exp %54 : vector<8x128xf32>
    %cst_20 = arith.constant 1.000000e+00 : f32
    %56 = vector.broadcast %cst_20 : f32 to vector<8x128xf32>
    %57 = arith.addf %56, %55 : vector<8x128xf32>
    %58 = arith.divf %56, %57 : vector<8x128xf32>
    %59 = vector.extract_strided_slice %46 {offsets = [0, 256], sizes = [8, 128], strides = [1, 1]} : vector<8x512xf32> to vector<8x128xf32>
    %60 = math.tanh %59 : vector<8x128xf32>
    %61 = vector.extract_strided_slice %46 {offsets = [0, 384], sizes = [8, 128], strides = [1, 1]} : vector<8x512xf32> to vector<8x128xf32>
    %62 = arith.negf %61 : vector<8x128xf32>
    %63 = math.exp %62 : vector<8x128xf32>
    %cst_21 = arith.constant 1.000000e+00 : f32
    %64 = vector.broadcast %cst_21 : f32 to vector<8x128xf32>
    %65 = arith.addf %64, %63 : vector<8x128xf32>
    %66 = arith.divf %64, %65 : vector<8x128xf32>
    %67 = arith.mulf %58, %38 : vector<8x128xf32>
    %68 = arith.mulf %52, %60 : vector<8x128xf32>
    %69 = arith.addf %67, %68 : vector<8x128xf32>
    %70 = math.tanh %69 : vector<8x128xf32>
    %71 = arith.mulf %66, %70 : vector<8x128xf32>
    %c2_i32 = arith.constant 2 : i32
    %c8_i32_22 = arith.constant 8 : i32
    %72 = arith.muli %c2_i32, %c8_i32_22 : i32
    %73 = arith.index_cast %72 : i32 to index
    %c0_23 = arith.constant 0 : index
    %74 = vector.load %arg8[%73, %c0_23] : memref<64x512xf32, #tpu.memory_space<vmem>>, vector<8x512xf32>
    %75 = arith.truncf %71 : vector<8x128xf32> to vector<8x128xbf16>
    %cst_24 = arith.constant dense<0.000000e+00> : vector<8x512xf32>
    %76 = tpu.matmul %75, %7, %cst_24 {dimension_numbers = #tpu.dot_dimension_numbers<[1], [0], [0], [1], [0, 0, 1, 1], [], []>} : vector<8x128xbf16>, vector<128x512xbf16>, vector<8x512xf32> -> vector<8x512xf32>
    %77 = arith.addf %74, %76 : vector<8x512xf32>
    %78 = vector.extract_strided_slice %77 {offsets = [0, 0], sizes = [8, 128], strides = [1, 1]} : vector<8x512xf32> to vector<8x128xf32>
    %79 = arith.negf %78 : vector<8x128xf32>
    %80 = math.exp %79 : vector<8x128xf32>
    %cst_25 = arith.constant 1.000000e+00 : f32
    %81 = vector.broadcast %cst_25 : f32 to vector<8x128xf32>
    %82 = arith.addf %81, %80 : vector<8x128xf32>
    %83 = arith.divf %81, %82 : vector<8x128xf32>
    %84 = vector.extract_strided_slice %77 {offsets = [0, 128], sizes = [8, 128], strides = [1, 1]} : vector<8x512xf32> to vector<8x128xf32>
    %85 = arith.negf %84 : vector<8x128xf32>
    %86 = math.exp %85 : vector<8x128xf32>
    %cst_26 = arith.constant 1.000000e+00 : f32
    %87 = vector.broadcast %cst_26 : f32 to vector<8x128xf32>
    %88 = arith.addf %87, %86 : vector<8x128xf32>
    %89 = arith.divf %87, %88 : vector<8x128xf32>
    %90 = vector.extract_strided_slice %77 {offsets = [0, 256], sizes = [8, 128], strides = [1, 1]} : vector<8x512xf32> to vector<8x128xf32>
    %91 = math.tanh %90 : vector<8x128xf32>
    %92 = vector.extract_strided_slice %77 {offsets = [0, 384], sizes = [8, 128], strides = [1, 1]} : vector<8x512xf32> to vector<8x128xf32>
    %93 = arith.negf %92 : vector<8x128xf32>
    %94 = math.exp %93 : vector<8x128xf32>
    %cst_27 = arith.constant 1.000000e+00 : f32
    %95 = vector.broadcast %cst_27 : f32 to vector<8x128xf32>
    %96 = arith.addf %95, %94 : vector<8x128xf32>
    %97 = arith.divf %95, %96 : vector<8x128xf32>
    %98 = arith.mulf %89, %69 : vector<8x128xf32>
    %99 = arith.mulf %83, %91 : vector<8x128xf32>
    %100 = arith.addf %98, %99 : vector<8x128xf32>
    %101 = math.tanh %100 : vector<8x128xf32>
    %102 = arith.mulf %97, %101 : vector<8x128xf32>
    %c3_i32 = arith.constant 3 : i32
    %c8_i32_28 = arith.constant 8 : i32
    %103 = arith.muli %c3_i32, %c8_i32_28 : i32
    %104 = arith.index_cast %103 : i32 to index
    %c0_29 = arith.constant 0 : index
    %105 = vector.load %arg8[%104, %c0_29] : memref<64x512xf32, #tpu.memory_space<vmem>>, vector<8x512xf32>
    %106 = arith.truncf %102 : vector<8x128xf32> to vector<8x128xbf16>
    %cst_30 = arith.constant dense<0.000000e+00> : vector<8x512xf32>
    %107 = tpu.matmul %106, %7, %cst_30 {dimension_numbers = #tpu.dot_dimension_numbers<[1], [0], [0], [1], [0, 0, 1, 1], [], []>} : vector<8x128xbf16>, vector<128x512xbf16>, vector<8x512xf32> -> vector<8x512xf32>
    %108 = arith.addf %105, %107 : vector<8x512xf32>
    %109 = vector.extract_strided_slice %108 {offsets = [0, 0], sizes = [8, 128], strides = [1, 1]} : vector<8x512xf32> to vector<8x128xf32>
    %110 = arith.negf %109 : vector<8x128xf32>
    %111 = math.exp %110 : vector<8x128xf32>
    %cst_31 = arith.constant 1.000000e+00 : f32
    %112 = vector.broadcast %cst_31 : f32 to vector<8x128xf32>
    %113 = arith.addf %112, %111 : vector<8x128xf32>
    %114 = arith.divf %112, %113 : vector<8x128xf32>
    %115 = vector.extract_strided_slice %108 {offsets = [0, 128], sizes = [8, 128], strides = [1, 1]} : vector<8x512xf32> to vector<8x128xf32>
    %116 = arith.negf %115 : vector<8x128xf32>
    %117 = math.exp %116 : vector<8x128xf32>
    %cst_32 = arith.constant 1.000000e+00 : f32
    %118 = vector.broadcast %cst_32 : f32 to vector<8x128xf32>
    %119 = arith.addf %118, %117 : vector<8x128xf32>
    %120 = arith.divf %118, %119 : vector<8x128xf32>
    %121 = vector.extract_strided_slice %108 {offsets = [0, 256], sizes = [8, 128], strides = [1, 1]} : vector<8x512xf32> to vector<8x128xf32>
    %122 = math.tanh %121 : vector<8x128xf32>
    %123 = vector.extract_strided_slice %108 {offsets = [0, 384], sizes = [8, 128], strides = [1, 1]} : vector<8x512xf32> to vector<8x128xf32>
    %124 = arith.negf %123 : vector<8x128xf32>
    %125 = math.exp %124 : vector<8x128xf32>
    %cst_33 = arith.constant 1.000000e+00 : f32
    %126 = vector.broadcast %cst_33 : f32 to vector<8x128xf32>
    %127 = arith.addf %126, %125 : vector<8x128xf32>
    %128 = arith.divf %126, %127 : vector<8x128xf32>
    %129 = arith.mulf %120, %100 : vector<8x128xf32>
    %130 = arith.mulf %114, %122 : vector<8x128xf32>
    %131 = arith.addf %129, %130 : vector<8x128xf32>
    %132 = math.tanh %131 : vector<8x128xf32>
    %133 = arith.mulf %128, %132 : vector<8x128xf32>
    %c4_i32 = arith.constant 4 : i32
    %c8_i32_34 = arith.constant 8 : i32
    %134 = arith.muli %c4_i32, %c8_i32_34 : i32
    %135 = arith.index_cast %134 : i32 to index
    %c0_35 = arith.constant 0 : index
    %136 = vector.load %arg8[%135, %c0_35] : memref<64x512xf32, #tpu.memory_space<vmem>>, vector<8x512xf32>
    %137 = arith.truncf %133 : vector<8x128xf32> to vector<8x128xbf16>
    %cst_36 = arith.constant dense<0.000000e+00> : vector<8x512xf32>
    %138 = tpu.matmul %137, %7, %cst_36 {dimension_numbers = #tpu.dot_dimension_numbers<[1], [0], [0], [1], [0, 0, 1, 1], [], []>} : vector<8x128xbf16>, vector<128x512xbf16>, vector<8x512xf32> -> vector<8x512xf32>
    %139 = arith.addf %136, %138 : vector<8x512xf32>
    %140 = vector.extract_strided_slice %139 {offsets = [0, 0], sizes = [8, 128], strides = [1, 1]} : vector<8x512xf32> to vector<8x128xf32>
    %141 = arith.negf %140 : vector<8x128xf32>
    %142 = math.exp %141 : vector<8x128xf32>
    %cst_37 = arith.constant 1.000000e+00 : f32
    %143 = vector.broadcast %cst_37 : f32 to vector<8x128xf32>
    %144 = arith.addf %143, %142 : vector<8x128xf32>
    %145 = arith.divf %143, %144 : vector<8x128xf32>
    %146 = vector.extract_strided_slice %139 {offsets = [0, 128], sizes = [8, 128], strides = [1, 1]} : vector<8x512xf32> to vector<8x128xf32>
    %147 = arith.negf %146 : vector<8x128xf32>
    %148 = math.exp %147 : vector<8x128xf32>
    %cst_38 = arith.constant 1.000000e+00 : f32
    %149 = vector.broadcast %cst_38 : f32 to vector<8x128xf32>
    %150 = arith.addf %149, %148 : vector<8x128xf32>
    %151 = arith.divf %149, %150 : vector<8x128xf32>
    %152 = vector.extract_strided_slice %139 {offsets = [0, 256], sizes = [8, 128], strides = [1, 1]} : vector<8x512xf32> to vector<8x128xf32>
    %153 = math.tanh %152 : vector<8x128xf32>
    %154 = vector.extract_strided_slice %139 {offsets = [0, 384], sizes = [8, 128], strides = [1, 1]} : vector<8x512xf32> to vector<8x128xf32>
    %155 = arith.negf %154 : vector<8x128xf32>
    %156 = math.exp %155 : vector<8x128xf32>
    %cst_39 = arith.constant 1.000000e+00 : f32
    %157 = vector.broadcast %cst_39 : f32 to vector<8x128xf32>
    %158 = arith.addf %157, %156 : vector<8x128xf32>
    %159 = arith.divf %157, %158 : vector<8x128xf32>
    %160 = arith.mulf %151, %131 : vector<8x128xf32>
    %161 = arith.mulf %145, %153 : vector<8x128xf32>
    %162 = arith.addf %160, %161 : vector<8x128xf32>
    %163 = math.tanh %162 : vector<8x128xf32>
    %164 = arith.mulf %159, %163 : vector<8x128xf32>
    %c5_i32 = arith.constant 5 : i32
    %c8_i32_40 = arith.constant 8 : i32
    %165 = arith.muli %c5_i32, %c8_i32_40 : i32
    %166 = arith.index_cast %165 : i32 to index
    %c0_41 = arith.constant 0 : index
    %167 = vector.load %arg8[%166, %c0_41] : memref<64x512xf32, #tpu.memory_space<vmem>>, vector<8x512xf32>
    %168 = arith.truncf %164 : vector<8x128xf32> to vector<8x128xbf16>
    %cst_42 = arith.constant dense<0.000000e+00> : vector<8x512xf32>
    %169 = tpu.matmul %168, %7, %cst_42 {dimension_numbers = #tpu.dot_dimension_numbers<[1], [0], [0], [1], [0, 0, 1, 1], [], []>} : vector<8x128xbf16>, vector<128x512xbf16>, vector<8x512xf32> -> vector<8x512xf32>
    %170 = arith.addf %167, %169 : vector<8x512xf32>
    %171 = vector.extract_strided_slice %170 {offsets = [0, 0], sizes = [8, 128], strides = [1, 1]} : vector<8x512xf32> to vector<8x128xf32>
    %172 = arith.negf %171 : vector<8x128xf32>
    %173 = math.exp %172 : vector<8x128xf32>
    %cst_43 = arith.constant 1.000000e+00 : f32
    %174 = vector.broadcast %cst_43 : f32 to vector<8x128xf32>
    %175 = arith.addf %174, %173 : vector<8x128xf32>
    %176 = arith.divf %174, %175 : vector<8x128xf32>
    %177 = vector.extract_strided_slice %170 {offsets = [0, 128], sizes = [8, 128], strides = [1, 1]} : vector<8x512xf32> to vector<8x128xf32>
    %178 = arith.negf %177 : vector<8x128xf32>
    %179 = math.exp %178 : vector<8x128xf32>
    %cst_44 = arith.constant 1.000000e+00 : f32
    %180 = vector.broadcast %cst_44 : f32 to vector<8x128xf32>
    %181 = arith.addf %180, %179 : vector<8x128xf32>
    %182 = arith.divf %180, %181 : vector<8x128xf32>
    %183 = vector.extract_strided_slice %170 {offsets = [0, 256], sizes = [8, 128], strides = [1, 1]} : vector<8x512xf32> to vector<8x128xf32>
    %184 = math.tanh %183 : vector<8x128xf32>
    %185 = vector.extract_strided_slice %170 {offsets = [0, 384], sizes = [8, 128], strides = [1, 1]} : vector<8x512xf32> to vector<8x128xf32>
    %186 = arith.negf %185 : vector<8x128xf32>
    %187 = math.exp %186 : vector<8x128xf32>
    %cst_45 = arith.constant 1.000000e+00 : f32
    %188 = vector.broadcast %cst_45 : f32 to vector<8x128xf32>
    %189 = arith.addf %188, %187 : vector<8x128xf32>
    %190 = arith.divf %188, %189 : vector<8x128xf32>
    %191 = arith.mulf %182, %162 : vector<8x128xf32>
    %192 = arith.mulf %176, %184 : vector<8x128xf32>
    %193 = arith.addf %191, %192 : vector<8x128xf32>
    %194 = math.tanh %193 : vector<8x128xf32>
    %195 = arith.mulf %190, %194 : vector<8x128xf32>
    %c6_i32 = arith.constant 6 : i32
    %c8_i32_46 = arith.constant 8 : i32
    %196 = arith.muli %c6_i32, %c8_i32_46 : i32
    %197 = arith.index_cast %196 : i32 to index
    %c0_47 = arith.constant 0 : index
    %198 = vector.load %arg8[%197, %c0_47] : memref<64x512xf32, #tpu.memory_space<vmem>>, vector<8x512xf32>
    %199 = arith.truncf %195 : vector<8x128xf32> to vector<8x128xbf16>
    %cst_48 = arith.constant dense<0.000000e+00> : vector<8x512xf32>
    %200 = tpu.matmul %199, %7, %cst_48 {dimension_numbers = #tpu.dot_dimension_numbers<[1], [0], [0], [1], [0, 0, 1, 1], [], []>} : vector<8x128xbf16>, vector<128x512xbf16>, vector<8x512xf32> -> vector<8x512xf32>
    %201 = arith.addf %198, %200 : vector<8x512xf32>
    %202 = vector.extract_strided_slice %201 {offsets = [0, 0], sizes = [8, 128], strides = [1, 1]} : vector<8x512xf32> to vector<8x128xf32>
    %203 = arith.negf %202 : vector<8x128xf32>
    %204 = math.exp %203 : vector<8x128xf32>
    %cst_49 = arith.constant 1.000000e+00 : f32
    %205 = vector.broadcast %cst_49 : f32 to vector<8x128xf32>
    %206 = arith.addf %205, %204 : vector<8x128xf32>
    %207 = arith.divf %205, %206 : vector<8x128xf32>
    %208 = vector.extract_strided_slice %201 {offsets = [0, 128], sizes = [8, 128], strides = [1, 1]} : vector<8x512xf32> to vector<8x128xf32>
    %209 = arith.negf %208 : vector<8x128xf32>
    %210 = math.exp %209 : vector<8x128xf32>
    %cst_50 = arith.constant 1.000000e+00 : f32
    %211 = vector.broadcast %cst_50 : f32 to vector<8x128xf32>
    %212 = arith.addf %211, %210 : vector<8x128xf32>
    %213 = arith.divf %211, %212 : vector<8x128xf32>
    %214 = vector.extract_strided_slice %201 {offsets = [0, 256], sizes = [8, 128], strides = [1, 1]} : vector<8x512xf32> to vector<8x128xf32>
    %215 = math.tanh %214 : vector<8x128xf32>
    %216 = vector.extract_strided_slice %201 {offsets = [0, 384], sizes = [8, 128], strides = [1, 1]} : vector<8x512xf32> to vector<8x128xf32>
    %217 = arith.negf %216 : vector<8x128xf32>
    %218 = math.exp %217 : vector<8x128xf32>
    %cst_51 = arith.constant 1.000000e+00 : f32
    %219 = vector.broadcast %cst_51 : f32 to vector<8x128xf32>
    %220 = arith.addf %219, %218 : vector<8x128xf32>
    %221 = arith.divf %219, %220 : vector<8x128xf32>
    %222 = arith.mulf %213, %193 : vector<8x128xf32>
    %223 = arith.mulf %207, %215 : vector<8x128xf32>
    %224 = arith.addf %222, %223 : vector<8x128xf32>
    %225 = math.tanh %224 : vector<8x128xf32>
    %226 = arith.mulf %221, %225 : vector<8x128xf32>
    %c7_i32 = arith.constant 7 : i32
    %c8_i32_52 = arith.constant 8 : i32
    %227 = arith.muli %c7_i32, %c8_i32_52 : i32
    %228 = arith.index_cast %227 : i32 to index
    %c0_53 = arith.constant 0 : index
    %229 = vector.load %arg8[%228, %c0_53] : memref<64x512xf32, #tpu.memory_space<vmem>>, vector<8x512xf32>
    %230 = arith.truncf %226 : vector<8x128xf32> to vector<8x128xbf16>
    %cst_54 = arith.constant dense<0.000000e+00> : vector<8x512xf32>
    %231 = tpu.matmul %230, %7, %cst_54 {dimension_numbers = #tpu.dot_dimension_numbers<[1], [0], [0], [1], [0, 0, 1, 1], [], []>} : vector<8x128xbf16>, vector<128x512xbf16>, vector<8x512xf32> -> vector<8x512xf32>
    %232 = arith.addf %229, %231 : vector<8x512xf32>
    %233 = vector.extract_strided_slice %232 {offsets = [0, 0], sizes = [8, 128], strides = [1, 1]} : vector<8x512xf32> to vector<8x128xf32>
    %234 = arith.negf %233 : vector<8x128xf32>
    %235 = math.exp %234 : vector<8x128xf32>
    %cst_55 = arith.constant 1.000000e+00 : f32
    %236 = vector.broadcast %cst_55 : f32 to vector<8x128xf32>
    %237 = arith.addf %236, %235 : vector<8x128xf32>
    %238 = arith.divf %236, %237 : vector<8x128xf32>
    %239 = vector.extract_strided_slice %232 {offsets = [0, 128], sizes = [8, 128], strides = [1, 1]} : vector<8x512xf32> to vector<8x128xf32>
    %240 = arith.negf %239 : vector<8x128xf32>
    %241 = math.exp %240 : vector<8x128xf32>
    %cst_56 = arith.constant 1.000000e+00 : f32
    %242 = vector.broadcast %cst_56 : f32 to vector<8x128xf32>
    %243 = arith.addf %242, %241 : vector<8x128xf32>
    %244 = arith.divf %242, %243 : vector<8x128xf32>
    %245 = vector.extract_strided_slice %232 {offsets = [0, 256], sizes = [8, 128], strides = [1, 1]} : vector<8x512xf32> to vector<8x128xf32>
    %246 = math.tanh %245 : vector<8x128xf32>
    %247 = vector.extract_strided_slice %232 {offsets = [0, 384], sizes = [8, 128], strides = [1, 1]} : vector<8x512xf32> to vector<8x128xf32>
    %248 = arith.negf %247 : vector<8x128xf32>
    %249 = math.exp %248 : vector<8x128xf32>
    %cst_57 = arith.constant 1.000000e+00 : f32
    %250 = vector.broadcast %cst_57 : f32 to vector<8x128xf32>
    %251 = arith.addf %250, %249 : vector<8x128xf32>
    %252 = arith.divf %250, %251 : vector<8x128xf32>
    %253 = arith.mulf %244, %224 : vector<8x128xf32>
    %254 = arith.mulf %238, %246 : vector<8x128xf32>
    %255 = arith.addf %253, %254 : vector<8x128xf32>
    %256 = math.tanh %255 : vector<8x128xf32>
    %257 = arith.mulf %252, %256 : vector<8x128xf32>
    %c8_i32_58 = arith.constant 8 : i32
    %258 = vector.extract_strided_slice %257 {offsets = [0, 0], sizes = [2, 128], strides = [1, 1]} : vector<8x128xf32> to vector<2x128xf32>
    %259 = vector.extract_strided_slice %257 {offsets = [2, 0], sizes = [2, 128], strides = [1, 1]} : vector<8x128xf32> to vector<2x128xf32>
    %260 = tpu.concatenate %258, %259 in 1 : vector<2x128xf32>, vector<2x128xf32> -> vector<2x256xf32>
    %c0_59 = arith.constant 0 : index
    %c0_60 = arith.constant 0 : index
    %261 = vector.load %arg5[%c0_59, %c0_60] : memref<256x2xf32, #tpu.memory_space<vmem>>, vector<256x2xf32>
    %cst_61 = arith.constant dense<0.000000e+00> : vector<2x2xf32>
    %262 = tpu.matmul %260, %261, %cst_61 {dimension_numbers = #tpu.dot_dimension_numbers<[1], [0], [0], [1], [0, 0, 1, 1], [], []>} : vector<2x256xf32>, vector<256x2xf32>, vector<2x2xf32> -> vector<2x2xf32>
    %c0_62 = arith.constant 0 : index
    %c0_63 = arith.constant 0 : index
    %263 = vector.load %arg6[%c0_62, %c0_63] : memref<1x2xf32, #tpu.memory_space<vmem>>, vector<1x2xf32>
    %264 = vector.broadcast %263 : vector<1x2xf32> to vector<2x2xf32>
    %265 = arith.addf %262, %264 : vector<2x2xf32>
    %c0_64 = arith.constant 0 : index
    %c0_65 = arith.constant 0 : index
    %266 = vector.load %arg7[%c0_64, %c0_65] : memref<2x2xf32, #tpu.memory_space<vmem>>, vector<2x2xf32>
    tpu.vector_store %arg7[%c0_64, %c0_65], %265 {strides = array<i32>} : memref<2x2xf32, #tpu.memory_space<vmem>>, vector<2x2xf32>,
    return
  }
  func.func @transform_0(%arg0: i32) -> (i32, i32) {
    %c0_i32 = arith.constant 0 : i32
    %c0_i32_0 = arith.constant 0 : i32
    %c0_i32_1 = arith.constant 0 : i32
    return %c0_i32, %c0_i32_0 : i32, i32
  }
  func.func @transform_1(%arg0: i32) -> (i32, i32) {
    %c0_i32 = arith.constant 0 : i32
    %c0_i32_0 = arith.constant 0 : i32
    %c0_i32_1 = arith.constant 0 : i32
    return %c0_i32, %c0_i32_0 : i32, i32
  }
  func.func @transform_2(%arg0: i32) -> (i32, i32) {
    %c0_i32 = arith.constant 0 : i32
    %c0_i32_0 = arith.constant 0 : i32
    %c0_i32_1 = arith.constant 0 : i32
    return %c0_i32, %c0_i32_0 : i32, i32
  }
  func.func @transform_3(%arg0: i32) -> (i32, i32) {
    %c0_i32 = arith.constant 0 : i32
    %c0_i32_0 = arith.constant 0 : i32
    %c0_i32_1 = arith.constant 0 : i32
    return %c0_i32, %c0_i32_0 : i32, i32
  }
  func.func @transform_4(%arg0: i32) -> (i32, i32) {
    %c0_i32 = arith.constant 0 : i32
    %c0_i32_0 = arith.constant 0 : i32
    %c0_i32_1 = arith.constant 0 : i32
    return %c0_i32, %c0_i32_0 : i32, i32
  }
  func.func @transform_5(%arg0: i32) -> (i32, i32) {
    %c0_i32 = arith.constant 0 : i32
    %c0_i32_0 = arith.constant 0 : i32
    %c0_i32_1 = arith.constant 0 : i32
    return %c0_i32, %c0_i32_0 : i32, i32
  }
  func.func @transform_6(%arg0: i32) -> (i32, i32) {
    %c0_i32 = arith.constant 0 : i32
    %c0_i32_0 = arith.constant 0 : i32
    %c0_i32_1 = arith.constant 0 : i32
    return %c0_i32, %c0_i32_0 : i32, i32
  }
}

</mosaic_0001>

<bundles_post_ra>
// kernel: malstm_forward.1
= control target key start
LH: loop header
LB: loop body
LE: loop exit
PB: predicated region body
PF: predicated region fallthrough
CT: control target
= control target key end

     0   :  { %vm111_vm0 = vcmask 261120   ;;  %s2837_s0 = inlined_call_operand.vmem [shape: bf16[64,32], index: 0, kind: input, shape index: {}]   ;;  %s2838_s1 = inlined_call_operand.vmem [shape: bf16[32,512], index: 1, kind: input, shape index: {}]   ;;  %s2839_s2 = inlined_call_operand.vmem [shape: bf16[128,512], index: 2, kind: input, shape index: {}]   ;;  %s2840_s3 = inlined_call_operand.vmem [shape: f32[1,512], index: 3, kind: input, shape index: {}]   ;;  %s2841_s4 = inlined_call_operand.vmem [shape: f32[256,2], index: 4, kind: input, shape index: {}]   ;;  %s2842_s5 = inlined_call_operand.vmem [shape: f32[1,2], index: 5, kind: input, shape index: {}]   ;;  %s2843_s6 = inlined_call_operand.hbm [shape: f32[2,2], index: 6, kind: output, shape index: {}]  }
   0x1   :  { %v1586_v0 = vld [vmem:[%s2838_s1 + $0x20] sm:$0xf]  ;;  %v1778_v1 = vld [vmem:[%s2838_s1 + $0x2c] sm:$0xf0]  ;;  %v1776_v2 = vld [vmem:[%s2838_s1 + $0x24] sm:$0xf] }
   0x2   :  { %v1587_v3 = vor.u32 %v1778_v1, %v1586_v0  ;;  %v1588_v4 = vld [vmem:[%s2838_s1 + $0x30] sm:$0xf0]  ;;  %v1594_v5 = vld [vmem:[%s2838_s1 + $0x28] sm:$0xf]  ;;  %v1779_v6 = vld [vmem:[%s2838_s1 + $0x34] sm:$0xf0] }
   0x3   :  { %v1591_v7 = vor.u32 %v1776_v2, %v1588_v4  ;;  %v1595_v8 = vor.u32 %v1779_v6, %v1594_v5  ;;  %v1777_v9 = vld [vmem:[%s2838_s1 + $0x2c] sm:$0xf]  ;;  %v1596_v10 = vld [vmem:[%s2838_s1 + $0x38] sm:$0xf0]  ;;  %v1570_v11 = vld [vmem:[%s2838_s1] sm:$0xf] }
   0x4   :  { %130 = vmatpush.bf16.msra.mxu0 %v1587_v3  ;;  %v1599_v12 = vor.u32 %v1777_v9, %v1596_v10  ;;  %v1774_v13 = vld [vmem:[%s2838_s1 + $0xc] sm:$0xf0]  ;;  %v1772_v14 = vld [vmem:[%s2838_s1 + $0x4] sm:$0xf]  ;;  %v1572_v15 = vld [vmem:[%s2838_s1 + $0x10] sm:$0xf0] }
   0x5   :  { %159 = vmatpush.bf16.msra.mxu1 %v1591_v7  ;;  %188 = vmatpush.bf16.msra.mxu2 %v1595_v8  ;;  %v1571_v16 = vor.u32 %v1774_v13, %v1570_v11  ;;  %v1575_v17 = vor.u32 %v1772_v14, %v1572_v15  ;;  %v1578_v18 = vld [vmem:[%s2838_s1 + $0x8] sm:$0xf]  ;;  %v1775_v19 = vld [vmem:[%s2838_s1 + $0x14] sm:$0xf0]  ;;  %v1773_v20 = vld [vmem:[%s2838_s1 + $0xc] sm:$0xf] }
   0x6   :  { %217 = vmatpush.bf16.msra.mxu3 %v1599_v12  ;;  %v1579_v21 = vor.u32 %v1775_v19, %v1578_v18  ;;  %v1580_v22 = vld [vmem:[%s2838_s1 + $0x18] sm:$0xf0]  ;;  %v1768_v23 = vld [vmem:[%s2837_s0] sm:$0xff]  ;;  %v1810_v26 = vld [vmem:[%s2839_s2 + $0xec] sm:$0xf0] }
   0x7   :  { %v1730_v24 = vld [vmem:[%s2839_s2 + $0xe0] sm:$0xf]  ;;  %v1583_v25 = vor.u32 %v1773_v20, %v1580_v22  ;;  %v1808_v27 = vld [vmem:[%s2839_s2 + $0xe4] sm:$0xf]  ;;  %v1732_v28 = vld [vmem:[%s2839_s2 + $0xf0] sm:$0xf0] }
   0x8   :  { %131 = vmatpush.bf16.msra.mxu0 %v1571_v16  ;;  %v2069_v29 = vor.u32 %v1810_v26, %v1730_v24  ;;  %v2071_v30 = vor.u32 %v1808_v27, %v1732_v28  ;;  %v1809_v31 = vld [vmem:[%s2839_s2 + $0xec] sm:$0xf]  ;;  %v1740_v32 = vld [vmem:[%s2839_s2 + $0xf8] sm:$0xf0]  ;;  %v1714_v33 = vld [vmem:[%s2839_s2 + $0xc0] sm:$0xf] }
   0x9   :  { %160 = vmatpush.bf16.msra.mxu1 %v1575_v17  ;;  %189 = vmatpush.bf16.msra.mxu2 %v1579_v21  ;;  %v1806_v34 = vld [vmem:[%s2839_s2 + $0xcc] sm:$0xf0]  ;;  %v1804_v35 = vld [vmem:[%s2839_s2 + $0xc4] sm:$0xf]  ;;  %v1716_v36 = vld [vmem:[%s2839_s2 + $0xd0] sm:$0xf0]  ;;  %v2092_v37 = vor.u32 %v1809_v31, %v1740_v32 }
   0xa   :  { %218 = vmatpush.bf16.msra.mxu3 %v1583_v25  ;;  %v2094_v38 = vor.u32 %v1806_v34, %v1714_v33  ;;  %v1805_v39 = vld [vmem:[%s2839_s2 + $0xcc] sm:$0xf]  ;;  %v1738_v40 = vld [vmem:[%s2839_s2 + $0xe8] sm:$0xf]  ;;  %v2104_v41 = vor.u32 %v1804_v35, %v1716_v36  ;;  %v1724_v42 = vld [vmem:[%s2839_s2 + $0xd8] sm:$0xf0] }
   0xb   :  { %1600 = vmatmul.msk.bf16.vlgmr.msra.gmra.mxu0 %vm111_vm0, %v1768_v23  ;;  %v1811_v43 = vld [vmem:[%s2839_s2 + $0xf4] sm:$0xf0]  ;;  %v1698_v44 = vld [vmem:[%s2839_s2 + $0xa0] sm:$0xf]  ;;  %v1802_v46 = vld [vmem:[%s2839_s2 + $0xac] sm:$0xf0]  ;;  %v2134_v50 = vor.u32 %v1805_v39, %v1724_v42 }
   0xc   :  { %468 = vmatpush.bf16.msrb.mxu0 %v2069_v29  ;;  %1604 = vmatmul.msk.bf16.vlgmr.msra.gmra.mxu1 %vm111_vm0, %v1768_v23  ;;  %v2117_v45 = vor.u32 %v1811_v43, %v1738_v40  ;;  %v1800_v47 = vld [vmem:[%s2839_s2 + $0xa4] sm:$0xf]  ;;  %v1700_v48 = vld [vmem:[%s2839_s2 + $0xb0] sm:$0xf0]  ;;  %v1722_v49 = vld [vmem:[%s2839_s2 + $0xc8] sm:$0xf]  ;;  %v2136_v51 = vor.u32 %v1802_v46, %v1698_v44 }
   0xd   :  { %481 = vmatpush.bf16.msrb.mxu1 %v2071_v30  ;;  %1608 = vmatmul.msk.bf16.vlgmr.msra.gmra.mxu2 %vm111_vm0, %v1768_v23  ;;  %v1801_v52 = vld [vmem:[%s2839_s2 + $0xac] sm:$0xf]  ;;  %v1708_v53 = vld [vmem:[%s2839_s2 + $0xb8] sm:$0xf0]  ;;  %v1807_v54 = vld [vmem:[%s2839_s2 + $0xd4] sm:$0xf0]  ;;  %v2149_v55 = vor.u32 %v1800_v47, %v1700_v48 }
   0xe   :  { %1612 = vmatmul.msk.bf16.vlgmr.msra.gmra.mxu3 %vm111_vm0, %v1768_v23  ;;  %494 = vmatpush.bf16.msrb.mxu2 %v2117_v45  ;;  %v2151_v56 = vor.u32 %v1807_v54, %v1722_v49  ;;  %v1682_v57 = vld [vmem:[%s2839_s2 + $0x80] sm:$0xf]  ;;  %v1798_v58 = vld [vmem:[%s2839_s2 + $0x8c] sm:$0xf0]  ;;  %v1796_v59 = vld [vmem:[%s2839_s2 + $0x84] sm:$0xf]  ;;  %v2173_v63 = vor.u32 %v1801_v52, %v1708_v53 }
   0xf   :  { %507 = vmatpush.bf16.msrb.mxu3 %v2092_v37  ;;  %v1684_v60 = vld [vmem:[%s2839_s2 + $0x90] sm:$0xf0]  ;;  %v1706_v61 = vld [vmem:[%s2839_s2 + $0xa8] sm:$0xf]  ;;  %v1803_v62 = vld [vmem:[%s2839_s2 + $0xb4] sm:$0xf0]  ;;  %v2175_v0 = vor.u32 %v1798_v58, %v1682_v57 }
  0x10   :  { %469 = vmatpush.bf16.msrb.mxu0 %v2094_v38  ;;  %v1797_v1 = vld [vmem:[%s2839_s2 + $0x8c] sm:$0xf]  ;;  %v2182_v2 = vor.u32 %v1796_v59, %v1684_v60  ;;  %v1692_v3 = vld [vmem:[%s2839_s2 + $0x98] sm:$0xf0]  ;;  %v2187_v4 = vor.u32 %v1803_v62, %v1706_v61  ;;  %v1666_v5 = vld [vmem:[%s2839_s2 + $0x60] sm:$0xf] }
  0x11   :  { %482 = vmatpush.bf16.msrb.mxu1 %v2104_v41  ;;  %v1794_v6 = vld [vmem:[%s2839_s2 + $0x6c] sm:$0xf0]  ;;  %v1792_v7 = vld [vmem:[%s2839_s2 + $0x64] sm:$0xf]  ;;  %v1668_v8 = vld [vmem:[%s2839_s2 + $0x70] sm:$0xf0]  ;;  %v2212_v12 = vor.u32 %v1797_v1, %v1692_v3 }
  0x12   :  { %495 = vmatpush.bf16.msrb.mxu2 %v2151_v56  ;;  %v1769_v9 = vld [vmem:[%s2837_s0 + $0x8] sm:$0xff]  ;;  %v1676_v11 = vld [vmem:[%s2839_s2 + $0x78] sm:$0xf0]  ;;  %v2214_v13 = vor.u32 %v1794_v6, %v1666_v5  ;;  %v1799_v15 = vld [vmem:[%s2839_s2 + $0x94] sm:$0xf0]  ;;  %v2227_v17 = vor.u32 %v1792_v7, %v1668_v8 }
  0x13   :  { %508 = vmatpush.bf16.msrb.mxu3 %v2134_v50  ;;  %v1793_v10 = vld [vmem:[%s2839_s2 + $0x6c] sm:$0xf]  ;;  %v1690_v14 = vld [vmem:[%s2839_s2 + $0x88] sm:$0xf]  ;;  %v1650_v16 = vld [vmem:[%s2839_s2 + $0x40] sm:$0xf] }
  0x14   :  { %470 = vmatpush.bf16.msrb.mxu0 %v2136_v51  ;;  %v1790_v18 = vld [vmem:[%s2839_s2 + $0x4c] sm:$0xf0] }
  0x15   :  { %483 = vmatpush.bf16.msrb.mxu1 %v2149_v55 }
  0x16   :  { %496 = vmatpush.bf16.msrb.mxu2 %v2187_v4 }
  0x17   :  { %509 = vmatpush.bf16.msrb.mxu3 %v2173_v63 }
  0x18   :  { %471 = vmatpush.bf16.msrb.mxu0 %v2175_v0 }
  0x19   :  { %484 = vmatpush.bf16.msrb.mxu1 %v2182_v2 }
  0x1a   :  { %11 = vsyncpa [#allocation4], 0  ;;  %v1788_v19 = vld [vmem:[%s2839_s2 + $0x44] sm:$0xf]  ;;  %v1652_v20 = vld [vmem:[%s2839_s2 + $0x50] sm:$0xf0]  ;;  %v2238_v21 = vor.u32 %v1799_v15, %v1690_v14  ;;  %v2242_v22 = vor.u32 %v1793_v10, %v1676_v11  ;;  %v2244_v23 = vor.u32 %v1790_v18, %v1650_v16 }
  0x1b   :  { %510 = vmatpush.bf16.msrb.mxu3 %v2212_v12  ;;  %v1674_v24 = vld [vmem:[%s2839_s2 + $0x68] sm:$0xf]  ;;  %v1795_v25 = vld [vmem:[%s2839_s2 + $0x74] sm:$0xf0]  ;;  %1601 = vmatmul.msk.bf16.gmra.mxu0 %vm111_vm0, %v1769_v9  ;;  %v2254_v26 = vor.u32 %v1788_v19, %v1652_v20  ;;  %v1789_v27 = vld [vmem:[%s2839_s2 + $0x4c] sm:$0xf] }
  0x1c   :  { %472 = vmatpush.bf16.msrb.mxu0 %v2214_v13  ;;  %v1660_v28 = vld [vmem:[%s2839_s2 + $0x58] sm:$0xf0]  ;;  %1605 = vmatmul.msk.bf16.gmra.mxu1 %vm111_vm0, %v1769_v9  ;;  %v2266_v31 = vor.u32 %v1795_v25, %v1674_v24  ;;  %v1634_v32 = vld [vmem:[%s2839_s2 + $0x20] sm:$0xf]  ;;  %v1786_v33 = vld [vmem:[%s2839_s2 + $0x2c] sm:$0xf0] }
  0x1d   :  { %485 = vmatpush.bf16.msrb.mxu1 %v2227_v17  ;;  %1609 = vmatmul.msk.bf16.gmra.mxu2 %vm111_vm0, %v1769_v9  ;;  %v1784_v34 = vld [vmem:[%s2839_s2 + $0x24] sm:$0xf]  ;;  %v2279_v35 = vor.u32 %v1789_v27, %v1660_v28  ;;  %v2281_v36 = vor.u32 %v1786_v33, %v1634_v32  ;;  %v1636_v39 = vld [vmem:[%s2839_s2 + $0x30] sm:$0xf0]  ;;  %v1658_v40 = vld [vmem:[%s2839_s2 + $0x48] sm:$0xf] }
  0x1e   :  { %1613 = vmatmul.msk.bf16.gmra.mxu3 %vm111_vm0, %v1769_v9  ;;  %497 = vmatpush.bf16.msrb.mxu2 %v2238_v21  ;;  %v1791_v42 = vld [vmem:[%s2839_s2 + $0x54] sm:$0xf0]  ;;  %v2293_v43 = vor.u32 %v1784_v34, %v1636_v39  ;;  %v1785_v44 = vld [vmem:[%s2839_s2 + $0x2c] sm:$0xf]  ;;  %v1644_v46 = vld [vmem:[%s2839_s2 + $0x38] sm:$0xf0] }
  0x1f   :  { %511 = vmatpush.bf16.msrb.mxu3 %v2242_v22  ;;  %v1618_v47 = vld [vmem:[%s2839_s2] sm:$0xf]  ;;  %v1782_v48 = vld [vmem:[%s2839_s2 + $0xc] sm:$0xf0]  ;;  %v1780_v49 = vld [vmem:[%s2839_s2 + $0x4] sm:$0xf]  ;;  %v2314_v53 = vor.u32 %v1791_v42, %v1658_v40  ;;  %v2318_v54 = vor.u32 %v1785_v44, %v1644_v46 }
  0x20   :  { %473 = vmatpush.bf16.msrb.mxu0 %v2244_v23  ;;  %v1620_v52 = vld [vmem:[%s2839_s2 + $0x10] sm:$0xf0]  ;;  %v2320_v57 = vor.u32 %v1782_v48, %v1618_v47  ;;  %v1642_v58 = vld [vmem:[%s2839_s2 + $0x28] sm:$0xf]  ;;  %v1787_v59 = vld [vmem:[%s2839_s2 + $0x34] sm:$0xf0] }
  0x21   :  { %486 = vmatpush.bf16.msrb.mxu1 %v2254_v26  ;;  %v2329_v60 = vor.u32 %v1780_v49, %v1620_v52  ;;  %v1781_v61 = vld [vmem:[%s2839_s2 + $0xc] sm:$0xf]  ;;  %v1628_v62 = vld [vmem:[%s2839_s2 + $0x18] sm:$0xf0]  ;;  %v2338_v1 = vor.u32 %v1787_v59, %v1642_v58  ;;  %v1626_v3 = vld [vmem:[%s2839_s2 + $0x8] sm:$0xf] }
  0x22   :  { %498 = vmatpush.bf16.msrb.mxu2 %v2266_v31  ;;  %v1783_v5 = vld [vmem:[%s2839_s2 + $0x14] sm:$0xf0]  ;;  %v2348_v6 = vor.u32 %v1781_v61, %v1628_v62  ;;  %v1770_v7 = vld [vmem:[%s2837_s0 + $0x10] sm:$0xff]  ;;  %v1969_v10 = vmov 0   ;;  %v41_v15 = vld [vmem:[%s2840_s3] sm:$0xf] }
  0x23   :  { %512 = vmatpush.bf16.msrb.mxu3 %v2279_v35  ;;  %v2357_v8 = vor.u32 %v1783_v5, %v1626_v3  ;;  %v1771_v9 = vld [vmem:[%s2837_s0 + $0x18] sm:$0xff]  ;;  %v43_v16 = vperm.slane %v41_v15, 0  ;;  %v44_v19 = vperm.slane %v41_v15, 1  ;;  %v2445_v32 = vperm.slane %v41_v15, 2  ;;  %s1970_s23 = smov [#allocation3]   ;;  %s1543_s27 = sshll.u32 %s2843_s6, 4  ;;  %s1544_s27 = int_to_ptr.hbm [resolvable:$true] %s1543_s27 }
  0x24   :  { %474 = vmatpush.bf16.msrb.mxu0 %v2281_v36  ;;  %v2447_v33 = vperm.slane %v41_v15, 3  ;;  %s1541_s24 = sshll.u32 %s1970_s23, 4  ;;  %s1542_s24 = int_to_ptr.vmem [resolvable:$true] %s1541_s24 }
  0x25   :  { %487 = vmatpush.bf16.msrb.mxu1 %v2293_v43 }
  0x26   :  { %499 = vmatpush.bf16.msrb.mxu2 %v2314_v53 }
  0x27   :  { %513 = vmatpush.bf16.msrb.mxu3 %v2318_v54 }
  0x28   :  { %475 = vmatpush.bf16.msrb.mxu0 %v2320_v57 }
  0x29   :  { %488 = vmatpush.bf16.msrb.mxu1 %v2329_v60 }
  0x2a   :  { %500 = vmatpush.bf16.msrb.mxu2 %v2338_v1 }
  0x2b   :  { %514 = vmatpush.bf16.msrb.mxu3 %v2348_v6  ;;  %1602 = vmatmul.msk.bf16.gmra.mxu0 %vm111_vm0, %v1770_v7 }
  0x2c   :  { %592 = vmatpush.bf16.msra.mxu0 %v2069_v29  ;;  %1606 = vmatmul.msk.bf16.gmra.mxu1 %vm111_vm0, %v1770_v7 }
  0x2d   :  { %605 = vmatpush.bf16.msra.mxu1 %v2071_v30  ;;  %1610 = vmatmul.msk.bf16.gmra.mxu2 %vm111_vm0, %v1770_v7 }
  0x2e   :  { %1614 = vmatmul.msk.bf16.gmra.mxu3 %vm111_vm0, %v1770_v7  ;;  %501 = vmatpush.bf16.msrb.mxu2 %v2357_v8 }
  0x2f   :  { %631 = vmatpush.bf16.msra.mxu3 %v2092_v37 }
  0x30   :  { %593 = vmatpush.bf16.msra.mxu0 %v2094_v38 }
  0x31   :  { %606 = vmatpush.bf16.msra.mxu1 %v2104_v41 }
  0x32   :  { %618 = vmatpush.bf16.msra.mxu2 %v2117_v45 }
  0x33   :  { %632 = vmatpush.bf16.msra.mxu3 %v2134_v50 }
  0x34   :  { %594 = vmatpush.bf16.msra.mxu0 %v2136_v51 }
  0x35   :  { %607 = vmatpush.bf16.msra.mxu1 %v2149_v55 }
  0x36   :  { %619 = vmatpush.bf16.msra.mxu2 %v2151_v56 }
  0x37   :  { %633 = vmatpush.bf16.msra.mxu3 %v2173_v63 }
  0x38   :  { %595 = vmatpush.bf16.msra.mxu0 %v2175_v0 }
  0x39   :  { %608 = vmatpush.bf16.msra.mxu1 %v2182_v2 }
  0x3a   :  { %620 = vmatpush.bf16.msra.mxu2 %v2187_v4 }
  0x3b   :  { %634 = vmatpush.bf16.msra.mxu3 %v2212_v12  ;;  %1603 = vmatmul.msk.bf16.gmra.mxu0 %vm111_vm0, %v1771_v9 }
  0x3c   :  { %596 = vmatpush.bf16.msra.mxu0 %v2214_v13  ;;  %1607 = vmatmul.msk.bf16.gmra.mxu1 %vm111_vm0, %v1771_v9 }
  0x3d   :  { %609 = vmatpush.bf16.msra.mxu1 %v2227_v17  ;;  %1611 = vmatmul.msk.bf16.gmra.mxu2 %vm111_vm0, %v1771_v9 }
  0x3e   :  { %621 = vmatpush.bf16.msra.mxu2 %v2238_v21  ;;  %1615 = vmatmul.msk.bf16.gmra.mxu3 %vm111_vm0, %v1771_v9 }
  0x3f   :  { %635 = vmatpush.bf16.msra.mxu3 %v2242_v22 }
  0x40   :  { %597 = vmatpush.bf16.msra.mxu0 %v2244_v23 }
  0x41   :  { %610 = vmatpush.bf16.msra.mxu1 %v2254_v26 }
  0x42   :  { %622 = vmatpush.bf16.msra.mxu2 %v2266_v31 }
  0x43   :  { %636 = vmatpush.bf16.msra.mxu3 %v2279_v35 }
  0x44   :  { %598 = vmatpush.bf16.msra.mxu0 %v2281_v36 }
  0x45   :  { %611 = vmatpush.bf16.msra.mxu1 %v2293_v43 }
  0x46   :  { %623 = vmatpush.bf16.msra.mxu2 %v2314_v53 }
  0x47   :  { %637 = vmatpush.bf16.msra.mxu3 %v2318_v54 }
  0x48   :  { %599 = vmatpush.bf16.msra.mxu0 %v2320_v57 }
  0x49   :  { %612 = vmatpush.bf16.msra.mxu1 %v2329_v60 }
  0x4a   :  { %624 = vmatpush.bf16.msra.mxu2 %v2338_v1 }
  0x4b   :  { %638 = vmatpush.bf16.msra.mxu3 %v2348_v6  ;;  %476 = vmatmul.bf16.vlgmr.msrb.gmra.mxu0 %v1969_v10 }
  0x4c   :  { %489 = vmatmul.bf16.vlgmr.msrb.gmra.mxu1 %v1969_v10  ;;  %716 = vmatpush.bf16.msrb.mxu0 %v2069_v29 }
  0x4d   :  { %502 = vmatmul.bf16.vlgmr.msrb.gmra.mxu2 %v1969_v10  ;;  %729 = vmatpush.bf16.msrb.mxu1 %v2071_v30 }
  0x4e   :  { %625 = vmatpush.bf16.msra.mxu2 %v2357_v8  ;;  %515 = vmatmul.bf16.vlgmr.msrb.gmra.mxu3 %v1969_v10 }
  0x4f   :  { %755 = vmatpush.bf16.msrb.mxu3 %v2092_v37 }
  0x50   :  { %717 = vmatpush.bf16.msrb.mxu0 %v2094_v38 }
  0x51   :  { %730 = vmatpush.bf16.msrb.mxu1 %v2104_v41 }
  0x52   :  { %742 = vmatpush.bf16.msrb.mxu2 %v2117_v45 }
  0x53   :  { %756 = vmatpush.bf16.msrb.mxu3 %v2134_v50 }
  0x54   :  { %718 = vmatpush.bf16.msrb.mxu0 %v2136_v51 }
  0x55   :  { %731 = vmatpush.bf16.msrb.mxu1 %v2149_v55 }
  0x56   :  { %743 = vmatpush.bf16.msrb.mxu2 %v2151_v56 }
  0x57   :  { %757 = vmatpush.bf16.msrb.mxu3 %v2173_v63 }
  0x58   :  { %719 = vmatpush.bf16.msrb.mxu0 %v2175_v0 }
  0x59   :  { %732 = vmatpush.bf16.msrb.mxu1 %v2182_v2 }
  0x5a   :  { %744 = vmatpush.bf16.msrb.mxu2 %v2187_v4 }
  0x5b   :  { %758 = vmatpush.bf16.msrb.mxu3 %v2212_v12 }
  0x5c   :  { %720 = vmatpush.bf16.msrb.mxu0 %v2214_v13 }
  0x5d   :  { %733 = vmatpush.bf16.msrb.mxu1 %v2227_v17 }
  0x5e   :  { %745 = vmatpush.bf16.msrb.mxu2 %v2238_v21 }
  0x5f   :  { %759 = vmatpush.bf16.msrb.mxu3 %v2242_v22 }
  0x60   :  { %721 = vmatpush.bf16.msrb.mxu0 %v2244_v23 }
  0x61   :  { %734 = vmatpush.bf16.msrb.mxu1 %v2254_v26 }
  0x62   :  { %746 = vmatpush.bf16.msrb.mxu2 %v2266_v31 }
  0x63   :  { %760 = vmatpush.bf16.msrb.mxu3 %v2279_v35 }
  0x64   :  { %722 = vmatpush.bf16.msrb.mxu0 %v2281_v36 }
  0x65   :  { %735 = vmatpush.bf16.msrb.mxu1 %v2293_v43 }
  0x66   :  { %747 = vmatpush.bf16.msrb.mxu2 %v2314_v53 }
  0x67   :  { %761 = vmatpush.bf16.msrb.mxu3 %v2318_v54 }
  0x68   :  { %723 = vmatpush.bf16.msrb.mxu0 %v2320_v57 }
  0x69   :  { %736 = vmatpush.bf16.msrb.mxu1 %v2329_v60 }
  0x6a   :  { %748 = vmatpush.bf16.msrb.mxu2 %v2338_v1 }
  0x6b   :  { %762 = vmatpush.bf16.msrb.mxu3 %v2348_v6 }
  0x6e   :  { %749 = vmatpush.bf16.msrb.mxu2 %v2357_v8 }
  0x88   :  { %v133_v11 = vpop.f32.mrf.mxu0 }
  0x89   :  { %v162_v14 = vpop.f32.mrf.mxu1 }
  0x90   :  { %v2437_v18 = vpop.f32.mrf.mxu2  ;;  %v135_v24 = vpop.f32.mrf.mxu0 }
  0x91   :  { %v2439_v20 = vpop.f32.mrf.mxu3  ;;  %v2441_v25 = vadd.f32 %v135_v24, %v43_v16  ;;  %v164_v27 = vpop.f32.mrf.mxu1 }
  0x92   :  { %v2443_v28 = vadd.f32 %v164_v27, %v44_v19 }
  0x98   :  { %v193_v34 = vpop.f32.mrf.mxu2  ;;  %v138_v42 = vpop.f32.mrf.mxu0 }
  0x99   :  { %v2450_v39 = vadd.f32 %v193_v34, %v2445_v32  ;;  %v222_v40 = vpop.f32.mrf.mxu3  ;;  %v2455_v46 = vadd.f32 %v138_v42, %v43_v16  ;;  %v167_v47 = vpop.f32.mrf.mxu1 }
  0x9a   :  { %v2453_v44 = vadd.f32 %v222_v40, %v2447_v33  ;;  %v2457_v48 = vadd.f32 %v167_v47, %v44_v19 }
  0xa0   :  { %v196_v49 = vpop.f32.mrf.mxu2  ;;  %v140_v59 = vpop.f32.mrf.mxu0 }
  0xa1   :  { %v2460_v52 = vadd.f32 %v196_v49, %v2445_v32  ;;  %v225_v58 = vpop.f32.mrf.mxu3  ;;  %v2465_v62 = vadd.f32 %v140_v59, %v43_v16  ;;  %v169_v3 = vpop.f32.mrf.mxu1 }
  0xa2   :  { %v2463_v61 = vadd.f32 %v225_v58, %v2447_v33  ;;  %v2467_v5 = vadd.f32 %v169_v3, %v44_v19 }
  0xa3   :  { %2844 = vst [vmem:[#allocation6_spill] sm:$0xff] %v2460_v52 }
  0xa4   :  { %2845 = vst [vmem:[#allocation7_spill] sm:$0xff] %v2465_v62 }
  0xa5   :  { %2846 = vst [vmem:[#allocation8_spill] sm:$0xff] %v2467_v5 }
  0xa8   :  { %v198_v7 = vpop.f32.mrf.mxu2  ;;  %v143_v15 = vpop.f32.mrf.mxu0 }
  0xa9   :  { %v2470_v9 = vadd.f32 %v198_v7, %v2445_v32  ;;  %v227_v10 = vpop.f32.mrf.mxu3  ;;  %v2475_v27 = vadd.f32 %v143_v15, %v43_v16  ;;  %v172_v34 = vpop.f32.mrf.mxu1 }
  0xaa   :  { %v2473_v24 = vadd.f32 %v227_v10, %v2447_v33  ;;  %v2477_v40 = vadd.f32 %v172_v34, %v44_v19 }
  0xab   :  { %2847 = vst [vmem:[#allocation9_spill] sm:$0xff] %v2470_v9 }
  0xac   :  { %2848 = vst [vmem:[#allocation10_spill] sm:$0xff] %v2473_v24 }
  0xad   :  { %2849 = vst [vmem:[#allocation11_spill] sm:$0xff] %v2475_v27 }
  0xae   :  { %2850 = vst [vmem:[#allocation12_spill] sm:$0xff] %v2477_v40 }
  0xb0   :  { %v201_v42 = vpop.f32.mrf.mxu2  ;;  %v145_v58 = vpop.f32.mrf.mxu0 }
  0xb1   :  { %v2480_v47 = vadd.f32 %v201_v42, %v2445_v32  ;;  %v230_v49 = vpop.f32.mrf.mxu3  ;;  %v2485_v3 = vadd.f32 %v145_v58, %v43_v16  ;;  %v174_v7 = vpop.f32.mrf.mxu1 }
  0xb2   :  { %v2483_v59 = vadd.f32 %v230_v49, %v2447_v33  ;;  %v2487_v9 = vadd.f32 %v174_v7, %v44_v19 }
  0xb3   :  { %2851 = vst [vmem:[#allocation13_spill] sm:$0xff] %v2480_v47 }
  0xb4   :  { %2852 = vst [vmem:[#allocation14_spill] sm:$0xff] %v2483_v59 }
  0xb5   :  { %2853 = vst [vmem:[#allocation15_spill] sm:$0xff] %v2485_v3 }
  0xb6   :  { %2854 = vst [vmem:[#allocation16_spill] sm:$0xff] %v2487_v9 }
  0xb8   :  { %v203_v10 = vpop.f32.mrf.mxu2  ;;  %v148_v40 = vpop.f32.mrf.mxu0 }
  0xb9   :  { %v2490_v15 = vadd.f32 %v203_v10, %v2445_v32  ;;  %v232_v34 = vpop.f32.mrf.mxu3  ;;  %v2495_v42 = vadd.f32 %v148_v40, %v43_v16  ;;  %v177_v47 = vpop.f32.mrf.mxu1 }
  0xba   :  { %v2493_v27 = vadd.f32 %v232_v34, %v2447_v33  ;;  %v2497_v24 = vadd.f32 %v177_v47, %v44_v19  ;;  %v134_v34 = vadd.f32 %v133_v11, %v43_v16  ;;  %v221_v11 = vadd.f32 %v2439_v20, %v2447_v33 }
  0xbb   :  { %2855 = vst [vmem:[#allocation17_spill] sm:$0xff] %v2490_v15 }
  0xbc   :  { %2856 = vst [vmem:[#allocation18_spill] sm:$0xff] %v2493_v27 }
  0xbd   :  { %2857 = vst [vmem:[#allocation19_spill] sm:$0xff] %v2495_v42  ;;  %v163_v42 = vadd.f32 %v162_v14, %v44_v19 }
  0xbe   :  { %2858 = vst [vmem:[#allocation20_spill] sm:$0xff] %v2497_v24 }
  0xc0   :  { %v206_v49 = vpop.f32.mrf.mxu2  ;;  %v150_v9 = vpop.f32.mrf.mxu0 }
  0xc1   :  { %v2500_v58 = vadd.f32 %v206_v49, %v2445_v32  ;;  %v235_v7 = vpop.f32.mrf.mxu3  ;;  %v2505_v10 = vadd.f32 %v150_v9, %v43_v16  ;;  %v179_v15 = vpop.f32.mrf.mxu1 }
  0xc2   :  { %v2503_v3 = vadd.f32 %v235_v7, %v2447_v33  ;;  %v2507_v59 = vadd.f32 %v179_v15, %v44_v19 }
  0xc3   :  { %2859 = vst [vmem:[#allocation21_spill] sm:$0xff] %v2500_v58 }
  0xc4   :  { %2860 = vst [vmem:[#allocation22_spill] sm:$0xff] %v2503_v3 }
  0xc5   :  { %2861 = vst [vmem:[#allocation23_spill] sm:$0xff] %v2505_v10 }
  0xc6   :  { %2862 = vst [vmem:[#allocation24_spill] sm:$0xff] %v2507_v59 }
  0xc8   :  { %v208_v40 = vpop.f32.mrf.mxu2  ;;  %v477_v27 = vpop.f32.mrf.mxu0 }
  0xc9   :  { %v2510_v47 = vadd.f32 %v208_v40, %v2445_v32  ;;  %v237_v24 = vpop.f32.mrf.mxu3  ;;  %v520_v58 = vadd.f32 %v477_v27, %v134_v34  ;;  %v490_v5 = vpop.f32.mrf.mxu1 }
  0xca   :  { %v2513_v49 = vadd.f32 %v237_v24, %v2447_v33  ;;  %v521_v7 = vadd.f32 %v490_v5, %v163_v42 }
  0xcb   :  { %2863 = vst [vmem:[#allocation25_spill] sm:$0xff] %v2510_v47  ;;  %v1744_v3 = vmul.f32 -1.442695, %v520_v58 }
  0xcc   :  { %2864 = vst [vmem:[#allocation26_spill] sm:$0xff] %v2513_v49  ;;  %v1745_v9 = vmul.f32 -1.442695, %v521_v7 }
  0xcd   :  { %1815 = vpow2.f32 %v1744_v3  ;;  %v192_v3 = vadd.f32 %v2437_v18, %v2445_v32 }
  0xce   :  { %1817 = vpow2.f32 %v1745_v9 }
  0xd0   :  { %v503_v16 = vpop.f32.mrf.mxu2  ;;  %v479_v19 = vpop.f32.mrf.mxu0 }
  0xd1   :  { %v516_v14 = vpop.f32.mrf.mxu3  ;;  %v492_v40 = vpop.f32.mrf.mxu1  ;;  %v522_v33 = vadd.f32 %v503_v16, %v192_v3 }
  0xd2   :  { %v523_v15 = vadd.f32 %v516_v14, %v221_v11 }
  0xd3   :  { %v1816_v47 = vpop.eup %1815 }
  0xd4   :  { %v1746_v59 = vmul.f32 -1.442695, %v523_v15  ;;  %v1818_v10 = vpop.eup %1817  ;;  %v527_v24 = vadd.f32 1.0, %v1816_v47 }
  0xd5   :  { %v546_v49 = vadd.f32 1.0, %v1818_v10 }
  0xd6   :  { %1819 = vpow2.f32 %v1746_v59  ;;  %v539_v47 = vand.u32 2147483648, %v527_v24  ;;  %v537_v19 = vand.u32 2147483647, %v527_v24  ;;  %vm533_vm3 = vweird.f32 %v527_v24 }
  0xd7   :  { %1821 = vrcp.f32 %v527_v24  ;;  %v558_v59 = vand.u32 2147483648, %v546_v49  ;;  %v556_v40 = vand.u32 2147483647, %v546_v49  ;;  %vm552_vm4 = vweird.f32 %v546_v49 }
  0xd8   :  { %1823 = vrcp.f32 %v546_v49  ;;  %v505_v5 = vpop.f32.mrf.mxu2  ;;  %v540_v16 = vor.u32 1.1754944e-38, %v539_v47  ;;  %vm538_vm6 = vcmp.eq.f32.partialorder %v537_v19, 8.507059e+37 }
  0xd9   :  { %v518_v27 = vpop.f32.mrf.mxu3  ;;  %vm557_vm8 = vcmp.eq.f32.partialorder %v556_v40, 8.507059e+37 }
  0xda   :  { %v559_v27 = vor.u32 1.1754944e-38, %v558_v59 }
  0xdc   :  { %v1820_v42 = vpop.eup %1819 }
  0xdd   :  { %v1822_v20 = vpop.eup %1821  ;;  %v566_v58 = vadd.f32 1.0, %v1820_v42 }
  0xde   :  { %v1824_v34 = vpop.eup %1823  ;;  %v529_v7 = vmul.f32 %v1822_v20, %v527_v24  ;;  %vm534_vm1 = vweird.f32 %v1822_v20 }
  0xdf   :  { %v548_v9 = vmul.f32 %v1824_v34, %v546_v49  ;;  %1825 = vrcp.f32 %v566_v58  ;;  %vm553_vm2 = vweird.f32 %v1824_v34  ;;  %vm535_vm5 = vmor %vm533_vm3, %vm534_vm1  ;;  %v578_v47 = vand.u32 2147483648, %v566_v58 }
  0xe0   :  { %v530_v11 = vsub.f32 1.0, %v529_v7  ;;  %1827 = vtanh.f32 %v522_v33  ;;  %vm554_vm7 = vmor %vm552_vm4, %vm553_vm2  ;;  %vm572_vm10 = vweird.f32 %v566_v58 }
  0xe1   :  { %v549_v14 = vsub.f32 1.0, %v548_v9  ;;  %v579_v19 = vor.u32 1.1754944e-38, %v578_v47 }
  0xe2   :  { %v531_v10 = vmul.f32 %v1822_v20, %v530_v11 }
  0xe3   :  { %v550_v15 = vmul.f32 %v1824_v34, %v549_v14 }
  0xe4   :  { %v532_v18 = vadd.f32 %v1822_v20, %v531_v10 }
  0xe5   :  { %v1826_v32 = vpop.eup %1825  ;;  %v551_v5 = vadd.f32 %v1824_v34, %v550_v15 }
  0xe6   :  { %v536_v3 = vsel %vm535_vm5, %v1822_v20, %v532_v18  ;;  %v568_v42 = vmul.f32 %v1826_v32, %v566_v58  ;;  %v1828_v33 = vpop.eup %1827  ;;  %vm573_vm9 = vweird.f32 %v1826_v32  ;;  %v576_v20 = vand.u32 2147483647, %v566_v58 }
  0xe7   :  { %v541_v7 = vsel %vm538_vm6, %v540_v16, %v536_v3  ;;  %v555_v9 = vsel %vm554_vm7, %v1824_v34, %v551_v5  ;;  %vm574_vm11 = vmor %vm572_vm10, %vm573_vm9 }
  0xe8   :  { %v560_v11 = vsel %vm557_vm8, %v559_v27, %v555_v9  ;;  %v583_v14 = vmul.f32 %v1828_v33, %v541_v7  ;;  %v569_v62 = vsub.f32 1.0, %v568_v42  ;;  %vm577_vm12 = vcmp.eq.f32.partialorder %v576_v20, 8.507059e+37 }
  0xe9   :  { %v582_v52 = vmul.f32 0.0, %v560_v11 }
  0xea   :  { %v570_v10 = vmul.f32 %v1826_v32, %v569_v62 }
  0xeb   :  { %v2519_v24 = vadd.f32 %v583_v14, %v582_v52 }
  0xec   :  { %v571_v49 = vadd.f32 %v1826_v32, %v570_v10 }
  0xed   :  { %1829 = vtanh.f32 %v2519_v24 }
  0xee   :  { %v575_v59 = vsel %vm574_vm11, %v1826_v32, %v571_v49 }
  0xef   :  { %v580_v15 = vsel %vm577_vm12, %v579_v19, %v575_v59 }
  0xf3   :  { %v1830_v34 = vpop.eup %1829 }
  0xf4   :  { %v586_v40 = vmul.f32 %v1830_v34, %v580_v15 }
  0xf6   :  { %v591_v18 = vpack.c.bf16 %v586_v40, %v586_v40 }
  0xf8   :  { %600 = vmatmul.bf16.vlgmr.msra.gmra.mxu0 %v591_v18  ;;  %613 = vmatmul.bf16.vlgmr.msra.gmra.mxu1 %v591_v18 }
  0xf9   :  { %626 = vmatmul.bf16.vlgmr.msra.gmra.mxu2 %v591_v18  ;;  %639 = vmatmul.bf16.vlgmr.msra.gmra.mxu3 %v591_v18 }
  0xfa   :  { %840 = vmatpush.bf16.msra.mxu0 %v2069_v29  ;;  %853 = vmatpush.bf16.msra.mxu1 %v2071_v30 }
  0xfb   :  { %866 = vmatpush.bf16.msra.mxu2 %v2117_v45  ;;  %879 = vmatpush.bf16.msra.mxu3 %v2092_v37 }
  0xfe   :  { %841 = vmatpush.bf16.msra.mxu0 %v2094_v38  ;;  %854 = vmatpush.bf16.msra.mxu1 %v2104_v41 }
  0xff   :  { %867 = vmatpush.bf16.msra.mxu2 %v2151_v56  ;;  %880 = vmatpush.bf16.msra.mxu3 %v2134_v50 }
 0x102   :  { %842 = vmatpush.bf16.msra.mxu0 %v2136_v51  ;;  %855 = vmatpush.bf16.msra.mxu1 %v2149_v55 }
 0x103   :  { %868 = vmatpush.bf16.msra.mxu2 %v2187_v4  ;;  %881 = vmatpush.bf16.msra.mxu3 %v2173_v63 }
 0x106   :  { %843 = vmatpush.bf16.msra.mxu0 %v2175_v0  ;;  %856 = vmatpush.bf16.msra.mxu1 %v2182_v2 }
 0x107   :  { %869 = vmatpush.bf16.msra.mxu2 %v2238_v21  ;;  %882 = vmatpush.bf16.msra.mxu3 %v2212_v12 }
 0x10a   :  { %844 = vmatpush.bf16.msra.mxu0 %v2214_v13  ;;  %857 = vmatpush.bf16.msra.mxu1 %v2227_v17 }
 0x10b   :  { %870 = vmatpush.bf16.msra.mxu2 %v2266_v31  ;;  %883 = vmatpush.bf16.msra.mxu3 %v2242_v22 }
 0x10e   :  { %845 = vmatpush.bf16.msra.mxu0 %v2244_v23  ;;  %858 = vmatpush.bf16.msra.mxu1 %v2254_v26 }
 0x10f   :  { %871 = vmatpush.bf16.msra.mxu2 %v2314_v53  ;;  %884 = vmatpush.bf16.msra.mxu3 %v2279_v35 }
 0x112   :  { %846 = vmatpush.bf16.msra.mxu0 %v2281_v36  ;;  %859 = vmatpush.bf16.msra.mxu1 %v2293_v43 }
 0x113   :  { %872 = vmatpush.bf16.msra.mxu2 %v2338_v1  ;;  %885 = vmatpush.bf16.msra.mxu3 %v2318_v54 }
 0x116   :  { %847 = vmatpush.bf16.msra.mxu0 %v2320_v57  ;;  %860 = vmatpush.bf16.msra.mxu1 %v2329_v60 }
 0x117   :  { %873 = vmatpush.bf16.msra.mxu2 %v2357_v8  ;;  %886 = vmatpush.bf16.msra.mxu3 %v2348_v6 }
 0x175   :  { %v601_v52 = vpop.f32.mrf.mxu0  ;;  %v614_v62 = vpop.f32.mrf.mxu1 }
 0x176   :  { %v644_v58 = vadd.f32 %v601_v52, %v2441_v25  ;;  %v645_v32 = vadd.f32 %v614_v62, %v2443_v28 }
 0x178   :  { %v1747_v16 = vmul.f32 -1.442695, %v644_v58  ;;  %v1748_v5 = vmul.f32 -1.442695, %v645_v32 }
 0x17a   :  { %1831 = vpow2.f32 %v1747_v16 }
 0x17b   :  { %1833 = vpow2.f32 %v1748_v5 }
 0x17c   :  { %v627_v27 = vpop.f32.mrf.mxu2  ;;  %v640_v3 = vpop.f32.mrf.mxu3 }
 0x17d   :  { %v647_v42 = vadd.f32 %v640_v3, %v2453_v44  ;;  %v603_v33 = vpop.f32.mrf.mxu0  ;;  %v616_v7 = vpop.f32.mrf.mxu1  ;;  %v646_v19 = vadd.f32 %v627_v27, %v2450_v39 }
 0x17f   :  { %v1749_v9 = vmul.f32 -1.442695, %v647_v42 }
 0x180   :  { %v1832_v11 = vpop.eup %1831 }
 0x181   :  { %v1834_v14 = vpop.eup %1833  ;;  %v651_v10 = vadd.f32 1.0, %v1832_v11  ;;  %1835 = vpow2.f32 %v1749_v9 }
 0x182   :  { %v670_v49 = vadd.f32 1.0, %v1834_v14 }
 0x183   :  { %1837 = vrcp.f32 %v651_v10  ;;  %v663_v52 = vand.u32 2147483648, %v651_v10  ;;  %v661_v32 = vand.u32 2147483647, %v651_v10  ;;  %vm657_vm15 = vweird.f32 %v651_v10 }
 0x184   :  { %1839 = vrcp.f32 %v670_v49  ;;  %v629_v25 = vpop.f32.mrf.mxu2  ;;  %v642_v28 = vpop.f32.mrf.mxu3  ;;  %v682_v62 = vand.u32 2147483648, %v670_v49  ;;  %v680_v5 = vand.u32 2147483647, %v670_v49  ;;  %vm676_vm0 = vweird.f32 %v670_v49 }
 0x185   :  { %v664_v39 = vor.u32 1.1754944e-38, %v663_v52  ;;  %vm662_vm3 = vcmp.eq.f32.partialorder %v661_v32, 8.507059e+37 }
 0x186   :  { %v683_v7 = vor.u32 1.1754944e-38, %v682_v62  ;;  %vm681_vm4 = vcmp.eq.f32.partialorder %v680_v5, 8.507059e+37 }
 0x187   :  { %v1836_v47 = vpop.eup %1835 }
 0x188   :  { %v690_v20 = vadd.f32 1.0, %v1836_v47 }
 0x189   :  { %v1838_v59 = vpop.eup %1837 }
 0x18a   :  { %v1840_v34 = vpop.eup %1839  ;;  %v653_v15 = vmul.f32 %v1838_v59, %v651_v10  ;;  %1841 = vrcp.f32 %v690_v20  ;;  %vm658_vm13 = vweird.f32 %v1838_v59  ;;  %vm696_vm6 = vweird.f32 %v690_v20 }
 0x18b   :  { %v672_v44 = vmul.f32 %v1840_v34, %v670_v49  ;;  %1843 = vtanh.f32 %v646_v19  ;;  %vm677_vm14 = vweird.f32 %v1840_v34  ;;  %vm659_vm1 = vmor %vm657_vm15, %vm658_vm13 }
 0x18c   :  { %v654_v40 = vsub.f32 1.0, %v653_v15  ;;  %vm678_vm2 = vmor %vm676_vm0, %vm677_vm14 }
 0x18d   :  { %v673_v18 = vsub.f32 1.0, %v672_v44 }
 0x18e   :  { %v655_v58 = vmul.f32 %v1838_v59, %v654_v40  ;;  %v702_v40 = vand.u32 2147483648, %v690_v20 }
 0x18f   :  { %v674_v16 = vmul.f32 %v1840_v34, %v673_v18 }
 0x190   :  { %v1842_v3 = vpop.eup %1841  ;;  %v656_v42 = vadd.f32 %v1838_v59, %v655_v58  ;;  %v703_v52 = vor.u32 1.1754944e-38, %v702_v40 }
 0x191   :  { %v675_v27 = vadd.f32 %v1840_v34, %v674_v16  ;;  %v692_v33 = vmul.f32 %v1842_v3, %v690_v20  ;;  %v1844_v11 = vpop.eup %1843  ;;  %vm697_vm5 = vweird.f32 %v1842_v3 }
 0x192   :  { %v660_v9 = vsel %vm659_vm1, %v1838_v59, %v656_v42  ;;  %v700_v59 = vand.u32 2147483647, %v690_v20  ;;  %vm698_vm7 = vmor %vm696_vm6, %vm697_vm5 }
 0x193   :  { %v665_v14 = vsel %vm662_vm3, %v664_v39, %v660_v9  ;;  %v679_v25 = vsel %vm678_vm2, %v1840_v34, %v675_v27  ;;  %v693_v28 = vsub.f32 1.0, %v692_v33 }
 0x194   :  { %v684_v47 = vsel %vm681_vm4, %v683_v7, %v679_v25  ;;  %v707_v19 = vmul.f32 %v1844_v11, %v665_v14  ;;  %vm701_vm8 = vcmp.eq.f32.partialorder %v700_v59, 8.507059e+37 }
 0x195   :  { %v706_v15 = vmul.f32 %v684_v47, %v2519_v24  ;;  %v694_v44 = vmul.f32 %v1842_v3, %v693_v28 }
 0x197   :  { %v2559_v10 = vadd.f32 %v707_v19, %v706_v15  ;;  %v695_v49 = vadd.f32 %v1842_v3, %v694_v44 }
 0x199   :  { %1845 = vtanh.f32 %v2559_v10  ;;  %v699_v18 = vsel %vm698_vm7, %v1842_v3, %v695_v49  ;;  %v2865_v49 = vld [vmem:[#allocation6_spill] sm:$0xff] }
 0x19a   :  { %v704_v62 = vsel %vm701_vm8, %v703_v52, %v699_v18 }
 0x19f   :  { %v1846_v34 = vpop.eup %1845 }
 0x1a0   :  { %v710_v58 = vmul.f32 %v1846_v34, %v704_v62 }
 0x1a2   :  { %v715_v32 = vpack.c.bf16 %v710_v58, %v710_v58 }
 0x1a4   :  { %724 = vmatmul.bf16.vlgmr.msrb.gmra.mxu0 %v715_v32  ;;  %737 = vmatmul.bf16.vlgmr.msrb.gmra.mxu1 %v715_v32 }
 0x1a5   :  { %750 = vmatmul.bf16.vlgmr.msrb.gmra.mxu2 %v715_v32  ;;  %763 = vmatmul.bf16.vlgmr.msrb.gmra.mxu3 %v715_v32 }
 0x1a6   :  { %964 = vmatpush.bf16.msrb.mxu0 %v2069_v29  ;;  %977 = vmatpush.bf16.msrb.mxu1 %v2071_v30 }
 0x1a7   :  { %990 = vmatpush.bf16.msrb.mxu2 %v2117_v45  ;;  %1003 = vmatpush.bf16.msrb.mxu3 %v2092_v37 }
 0x1aa   :  { %965 = vmatpush.bf16.msrb.mxu0 %v2094_v38  ;;  %978 = vmatpush.bf16.msrb.mxu1 %v2104_v41 }
 0x1ab   :  { %991 = vmatpush.bf16.msrb.mxu2 %v2151_v56  ;;  %1004 = vmatpush.bf16.msrb.mxu3 %v2134_v50 }
 0x1ae   :  { %966 = vmatpush.bf16.msrb.mxu0 %v2136_v51  ;;  %979 = vmatpush.bf16.msrb.mxu1 %v2149_v55 }
 0x1af   :  { %992 = vmatpush.bf16.msrb.mxu2 %v2187_v4  ;;  %1005 = vmatpush.bf16.msrb.mxu3 %v2173_v63 }
 0x1b2   :  { %967 = vmatpush.bf16.msrb.mxu0 %v2175_v0  ;;  %980 = vmatpush.bf16.msrb.mxu1 %v2182_v2 }
 0x1b3   :  { %993 = vmatpush.bf16.msrb.mxu2 %v2238_v21  ;;  %1006 = vmatpush.bf16.msrb.mxu3 %v2212_v12 }
 0x1b6   :  { %968 = vmatpush.bf16.msrb.mxu0 %v2214_v13  ;;  %981 = vmatpush.bf16.msrb.mxu1 %v2227_v17 }
 0x1b7   :  { %994 = vmatpush.bf16.msrb.mxu2 %v2266_v31  ;;  %1007 = vmatpush.bf16.msrb.mxu3 %v2242_v22 }
 0x1ba   :  { %969 = vmatpush.bf16.msrb.mxu0 %v2244_v23  ;;  %982 = vmatpush.bf16.msrb.mxu1 %v2254_v26 }
 0x1bb   :  { %995 = vmatpush.bf16.msrb.mxu2 %v2314_v53  ;;  %1008 = vmatpush.bf16.msrb.mxu3 %v2279_v35 }
 0x1be   :  { %970 = vmatpush.bf16.msrb.mxu0 %v2281_v36  ;;  %983 = vmatpush.bf16.msrb.mxu1 %v2293_v43 }
 0x1bf   :  { %996 = vmatpush.bf16.msrb.mxu2 %v2338_v1  ;;  %1009 = vmatpush.bf16.msrb.mxu3 %v2318_v54 }
 0x1c2   :  { %971 = vmatpush.bf16.msrb.mxu0 %v2320_v57  ;;  %984 = vmatpush.bf16.msrb.mxu1 %v2329_v60 }
 0x1c3   :  { %997 = vmatpush.bf16.msrb.mxu2 %v2357_v8  ;;  %1010 = vmatpush.bf16.msrb.mxu3 %v2348_v6 }
 0x221   :  { %v725_v24 = vpop.f32.mrf.mxu0  ;;  %v738_v20 = vpop.f32.mrf.mxu1 }
 0x222   :  { %v768_v16 = vadd.f32 %v725_v24, %v2455_v46  ;;  %v769_v5 = vadd.f32 %v738_v20, %v2457_v48 }
 0x224   :  { %v1750_v3 = vmul.f32 -1.442695, %v768_v16  ;;  %v1751_v42 = vmul.f32 -1.442695, %v769_v5 }
 0x226   :  { %1847 = vpow2.f32 %v1750_v3 }
 0x227   :  { %1849 = vpow2.f32 %v1751_v42 }
 0x228   :  { %v751_v39 = vpop.f32.mrf.mxu2  ;;  %v764_v27 = vpop.f32.mrf.mxu3 }
 0x229   :  { %v771_v33 = vadd.f32 %v764_v27, %v2463_v61  ;;  %v727_v7 = vpop.f32.mrf.mxu0  ;;  %v740_v9 = vpop.f32.mrf.mxu1  ;;  %v770_v40 = vadd.f32 %v751_v39, %v2865_v49 }
 0x22b   :  { %v1752_v11 = vmul.f32 -1.442695, %v771_v33 }
 0x22c   :  { %v1848_v14 = vpop.eup %1847 }
 0x22d   :  { %v1850_v25 = vpop.eup %1849  ;;  %v775_v28 = vadd.f32 1.0, %v1848_v14  ;;  %1851 = vpow2.f32 %v1752_v11 }
 0x22e   :  { %v794_v47 = vadd.f32 1.0, %v1850_v25 }
 0x22f   :  { %1853 = vrcp.f32 %v775_v28  ;;  %v787_v62 = vand.u32 2147483648, %v775_v28  ;;  %v785_v24 = vand.u32 2147483647, %v775_v28  ;;  %vm781_vm11 = vweird.f32 %v775_v28 }
 0x230   :  { %1855 = vrcp.f32 %v794_v47  ;;  %v753_v46 = vpop.f32.mrf.mxu2  ;;  %v766_v48 = vpop.f32.mrf.mxu3  ;;  %v806_v58 = vand.u32 2147483648, %v794_v47  ;;  %v804_v16 = vand.u32 2147483647, %v794_v47  ;;  %vm800_vm12 = vweird.f32 %v794_v47 }
 0x231   :  { %v788_v42 = vor.u32 1.1754944e-38, %v787_v62  ;;  %vm786_vm15 = vcmp.eq.f32.partialorder %v785_v24, 8.507059e+37  ;;  %v2867_v24 = vld [vmem:[#allocation8_spill] sm:$0xff] }
 0x232   :  { %v807_v33 = vor.u32 1.1754944e-38, %v806_v58  ;;  %vm805_vm0 = vcmp.eq.f32.partialorder %v804_v16, 8.507059e+37  ;;  %v2866_v58 = vld [vmem:[#allocation7_spill] sm:$0xff] }
 0x233   :  { %v1852_v19 = vpop.eup %1851 }
 0x234   :  { %v814_v15 = vadd.f32 1.0, %v1852_v19 }
 0x235   :  { %v1854_v44 = vpop.eup %1853 }
 0x236   :  { %v1856_v59 = vpop.eup %1855  ;;  %v777_v18 = vmul.f32 %v1854_v44, %v775_v28  ;;  %1857 = vrcp.f32 %v814_v15  ;;  %vm782_vm9 = vweird.f32 %v1854_v44  ;;  %vm820_vm2 = vweird.f32 %v814_v15 }
 0x237   :  { %v796_v61 = vmul.f32 %v1856_v59, %v794_v47  ;;  %1859 = vtanh.f32 %v770_v40  ;;  %vm801_vm10 = vweird.f32 %v1856_v59  ;;  %vm783_vm13 = vmor %vm781_vm11, %vm782_vm9  ;;  %v826_v40 = vand.u32 2147483648, %v814_v15 }
 0x238   :  { %v778_v52 = vsub.f32 1.0, %v777_v18  ;;  %vm802_vm14 = vmor %vm800_vm12, %vm801_vm10 }
 0x239   :  { %v797_v34 = vsub.f32 1.0, %v796_v61  ;;  %v827_v61 = vor.u32 1.1754944e-38, %v826_v40 }
 0x23a   :  { %v779_v32 = vmul.f32 %v1854_v44, %v778_v52 }
 0x23b   :  { %v798_v20 = vmul.f32 %v1856_v59, %v797_v34 }
 0x23c   :  { %v1858_v5 = vpop.eup %1857  ;;  %v780_v3 = vadd.f32 %v1854_v44, %v779_v32 }
 0x23d   :  { %v799_v39 = vadd.f32 %v1856_v59, %v798_v20  ;;  %v816_v27 = vmul.f32 %v1858_v5, %v814_v15  ;;  %v1860_v9 = vpop.eup %1859  ;;  %vm821_vm1 = vweird.f32 %v1858_v5 }
 0x23e   :  { %v784_v7 = vsel %vm783_vm13, %v1854_v44, %v780_v3  ;;  %v824_v44 = vand.u32 2147483647, %v814_v15  ;;  %vm822_vm3 = vmor %vm820_vm2, %vm821_vm1 }
 0x23f   :  { %v789_v11 = vsel %vm786_vm15, %v788_v42, %v784_v7  ;;  %v803_v14 = vsel %vm802_vm14, %v1856_v59, %v799_v39  ;;  %v817_v25 = vsub.f32 1.0, %v816_v27  ;;  %v2868_v39 = vld [vmem:[#allocation10_spill] sm:$0xff] }
 0x240   :  { %v808_v46 = vsel %vm805_vm0, %v807_v33, %v803_v14  ;;  %v831_v48 = vmul.f32 %v1860_v9, %v789_v11  ;;  %vm825_vm4 = vcmp.eq.f32.partialorder %v824_v44, 8.507059e+37  ;;  %v2869_v44 = vld [vmem:[#allocation9_spill] sm:$0xff] }
 0x241   :  { %v830_v19 = vmul.f32 %v808_v46, %v2559_v10  ;;  %v818_v49 = vmul.f32 %v1858_v5, %v817_v25 }
 0x243   :  { %v2599_v28 = vadd.f32 %v831_v48, %v830_v19  ;;  %v819_v47 = vadd.f32 %v1858_v5, %v818_v49 }
 0x245   :  { %1861 = vtanh.f32 %v2599_v28  ;;  %v823_v18 = vsel %vm822_vm3, %v1858_v5, %v819_v47 }
 0x246   :  { %v828_v52 = vsel %vm825_vm4, %v827_v61, %v823_v18 }
 0x24b   :  { %v1862_v59 = vpop.eup %1861 }
 0x24c   :  { %v834_v34 = vmul.f32 %v1862_v59, %v828_v52 }
 0x24e   :  { %v839_v62 = vpack.c.bf16 %v834_v34, %v834_v34 }
 0x250   :  { %848 = vmatmul.bf16.vlgmr.msra.gmra.mxu0 %v839_v62  ;;  %861 = vmatmul.bf16.vlgmr.msra.gmra.mxu1 %v839_v62 }
 0x251   :  { %874 = vmatmul.bf16.vlgmr.msra.gmra.mxu2 %v839_v62  ;;  %887 = vmatmul.bf16.vlgmr.msra.gmra.mxu3 %v839_v62 }
 0x252   :  { %1088 = vmatpush.bf16.msra.mxu0 %v2069_v29  ;;  %1101 = vmatpush.bf16.msra.mxu1 %v2071_v30 }
 0x253   :  { %1114 = vmatpush.bf16.msra.mxu2 %v2117_v45  ;;  %1127 = vmatpush.bf16.msra.mxu3 %v2092_v37 }
 0x256   :  { %1089 = vmatpush.bf16.msra.mxu0 %v2094_v38  ;;  %1102 = vmatpush.bf16.msra.mxu1 %v2104_v41 }
 0x257   :  { %1115 = vmatpush.bf16.msra.mxu2 %v2151_v56  ;;  %1128 = vmatpush.bf16.msra.mxu3 %v2134_v50 }
 0x25a   :  { %1090 = vmatpush.bf16.msra.mxu0 %v2136_v51  ;;  %1103 = vmatpush.bf16.msra.mxu1 %v2149_v55 }
 0x25b   :  { %1116 = vmatpush.bf16.msra.mxu2 %v2187_v4  ;;  %1129 = vmatpush.bf16.msra.mxu3 %v2173_v63 }
 0x25e   :  { %1091 = vmatpush.bf16.msra.mxu0 %v2175_v0  ;;  %1104 = vmatpush.bf16.msra.mxu1 %v2182_v2 }
 0x25f   :  { %1117 = vmatpush.bf16.msra.mxu2 %v2238_v21  ;;  %1130 = vmatpush.bf16.msra.mxu3 %v2212_v12 }
 0x262   :  { %1092 = vmatpush.bf16.msra.mxu0 %v2214_v13  ;;  %1105 = vmatpush.bf16.msra.mxu1 %v2227_v17 }
 0x263   :  { %1118 = vmatpush.bf16.msra.mxu2 %v2266_v31  ;;  %1131 = vmatpush.bf16.msra.mxu3 %v2242_v22 }
 0x266   :  { %1093 = vmatpush.bf16.msra.mxu0 %v2244_v23  ;;  %1106 = vmatpush.bf16.msra.mxu1 %v2254_v26 }
 0x267   :  { %1119 = vmatpush.bf16.msra.mxu2 %v2314_v53  ;;  %1132 = vmatpush.bf16.msra.mxu3 %v2279_v35 }
 0x26a   :  { %1094 = vmatpush.bf16.msra.mxu0 %v2281_v36  ;;  %1107 = vmatpush.bf16.msra.mxu1 %v2293_v43 }
 0x26b   :  { %1120 = vmatpush.bf16.msra.mxu2 %v2338_v1  ;;  %1133 = vmatpush.bf16.msra.mxu3 %v2318_v54 }
 0x26e   :  { %1095 = vmatpush.bf16.msra.mxu0 %v2320_v57  ;;  %1108 = vmatpush.bf16.msra.mxu1 %v2329_v60 }
 0x26f   :  { %1121 = vmatpush.bf16.msra.mxu2 %v2357_v8  ;;  %1134 = vmatpush.bf16.msra.mxu3 %v2348_v6 }
 0x2cd   :  { %v849_v10 = vpop.f32.mrf.mxu0  ;;  %v862_v15 = vpop.f32.mrf.mxu1 }
 0x2ce   :  { %v892_v32 = vadd.f32 %v849_v10, %v2866_v58  ;;  %v893_v20 = vadd.f32 %v862_v15, %v2867_v24 }
 0x2d0   :  { %v1753_v16 = vmul.f32 -1.442695, %v892_v32  ;;  %v1754_v5 = vmul.f32 -1.442695, %v893_v20 }
 0x2d2   :  { %1863 = vpow2.f32 %v1753_v16 }
 0x2d3   :  { %1865 = vpow2.f32 %v1754_v5 }
 0x2d4   :  { %v875_v3 = vpop.f32.mrf.mxu2  ;;  %v888_v42 = vpop.f32.mrf.mxu3 }
 0x2d5   :  { %v895_v27 = vadd.f32 %v888_v42, %v2868_v39  ;;  %v851_v33 = vpop.f32.mrf.mxu0  ;;  %v864_v7 = vpop.f32.mrf.mxu1  ;;  %v894_v18 = vadd.f32 %v875_v3, %v2869_v44 }
 0x2d7   :  { %v1755_v9 = vmul.f32 -1.442695, %v895_v27 }
 0x2d8   :  { %v1864_v11 = vpop.eup %1863 }
 0x2d9   :  { %v1866_v14 = vpop.eup %1865  ;;  %v899_v25 = vadd.f32 1.0, %v1864_v11  ;;  %1867 = vpow2.f32 %v1755_v9 }
 0x2da   :  { %v918_v46 = vadd.f32 1.0, %v1866_v14 }
 0x2db   :  { %1869 = vrcp.f32 %v899_v25  ;;  %v911_v10 = vand.u32 2147483648, %v899_v25  ;;  %v909_v32 = vand.u32 2147483647, %v899_v25  ;;  %vm905_vm7 = vweird.f32 %v899_v25 }
 0x2dc   :  { %1871 = vrcp.f32 %v918_v46  ;;  %v877_v48 = vpop.f32.mrf.mxu2  ;;  %v890_v19 = vpop.f32.mrf.mxu3  ;;  %v930_v15 = vand.u32 2147483648, %v918_v46  ;;  %v928_v20 = vand.u32 2147483647, %v918_v46  ;;  %vm924_vm8 = vweird.f32 %v918_v46 }
 0x2dd   :  { %v912_v3 = vor.u32 1.1754944e-38, %v911_v10  ;;  %vm910_vm11 = vcmp.eq.f32.partialorder %v909_v32, 8.507059e+37  ;;  %v2871_v32 = vld [vmem:[#allocation12_spill] sm:$0xff] }
 0x2de   :  { %v931_v27 = vor.u32 1.1754944e-38, %v930_v15  ;;  %vm929_vm12 = vcmp.eq.f32.partialorder %v928_v20, 8.507059e+37  ;;  %v2870_v15 = vld [vmem:[#allocation11_spill] sm:$0xff] }
 0x2df   :  { %v1868_v49 = vpop.eup %1867 }
 0x2e0   :  { %v938_v47 = vadd.f32 1.0, %v1868_v49 }
 0x2e1   :  { %v1870_v40 = vpop.eup %1869 }
 0x2e2   :  { %v1872_v61 = vpop.eup %1871  ;;  %v901_v59 = vmul.f32 %v1870_v40, %v899_v25  ;;  %1873 = vrcp.f32 %v938_v47  ;;  %vm906_vm5 = vweird.f32 %v1870_v40  ;;  %vm944_vm14 = vweird.f32 %v938_v47 }
 0x2e3   :  { %v920_v52 = vmul.f32 %v1872_v61, %v918_v46  ;;  %1875 = vtanh.f32 %v894_v18  ;;  %vm925_vm6 = vweird.f32 %v1872_v61  ;;  %vm907_vm9 = vmor %vm905_vm7, %vm906_vm5  ;;  %v950_v18 = vand.u32 2147483648, %v938_v47 }
 0x2e4   :  { %v902_v34 = vsub.f32 1.0, %v901_v59  ;;  %vm926_vm10 = vmor %vm924_vm8, %vm925_vm6 }
 0x2e5   :  { %v921_v62 = vsub.f32 1.0, %v920_v52  ;;  %v951_v52 = vor.u32 1.1754944e-38, %v950_v18 }
 0x2e6   :  { %v903_v58 = vmul.f32 %v1870_v40, %v902_v34 }
 0x2e7   :  { %v922_v24 = vmul.f32 %v1872_v61, %v921_v62 }
 0x2e8   :  { %v1874_v16 = vpop.eup %1873  ;;  %v904_v5 = vadd.f32 %v1870_v40, %v903_v58 }
 0x2e9   :  { %v923_v42 = vadd.f32 %v1872_v61, %v922_v24  ;;  %v940_v39 = vmul.f32 %v1874_v16, %v938_v47  ;;  %v1876_v7 = vpop.eup %1875  ;;  %vm945_vm13 = vweird.f32 %v1874_v16 }
 0x2ea   :  { %v908_v33 = vsel %vm907_vm9, %v1870_v40, %v904_v5  ;;  %v948_v40 = vand.u32 2147483647, %v938_v47  ;;  %vm946_vm15 = vmor %vm944_vm14, %vm945_vm13 }
 0x2eb   :  { %v913_v9 = vsel %vm910_vm11, %v912_v3, %v908_v33  ;;  %v927_v11 = vsel %vm926_vm10, %v1872_v61, %v923_v42  ;;  %v941_v14 = vsub.f32 1.0, %v940_v39  ;;  %v2872_v42 = vld [vmem:[#allocation14_spill] sm:$0xff] }
 0x2ec   :  { %v932_v48 = vsel %vm929_vm12, %v931_v27, %v927_v11  ;;  %v955_v19 = vmul.f32 %v1876_v7, %v913_v9  ;;  %vm949_vm0 = vcmp.eq.f32.partialorder %v948_v40, 8.507059e+37  ;;  %v2873_v40 = vld [vmem:[#allocation13_spill] sm:$0xff] }
 0x2ed   :  { %v954_v49 = vmul.f32 %v932_v48, %v2599_v28  ;;  %v942_v44 = vmul.f32 %v1874_v16, %v941_v14 }
 0x2ef   :  { %v2639_v25 = vadd.f32 %v955_v19, %v954_v49  ;;  %v943_v46 = vadd.f32 %v1874_v16, %v942_v44 }
 0x2f1   :  { %1877 = vtanh.f32 %v2639_v25  ;;  %v947_v59 = vsel %vm946_vm15, %v1874_v16, %v943_v46 }
 0x2f2   :  { %v952_v34 = vsel %vm949_vm0, %v951_v52, %v947_v59 }
 0x2f7   :  { %v1878_v61 = vpop.eup %1877 }
 0x2f8   :  { %v958_v62 = vmul.f32 %v1878_v61, %v952_v34 }
 0x2fa   :  { %v963_v10 = vpack.c.bf16 %v958_v62, %v958_v62 }
 0x2fc   :  { %972 = vmatmul.bf16.vlgmr.msrb.gmra.mxu0 %v963_v10  ;;  %985 = vmatmul.bf16.vlgmr.msrb.gmra.mxu1 %v963_v10 }
 0x2fd   :  { %998 = vmatmul.bf16.vlgmr.msrb.gmra.mxu2 %v963_v10  ;;  %1011 = vmatmul.bf16.vlgmr.msrb.gmra.mxu3 %v963_v10 }
 0x2fe   :  { %1212 = vmatpush.bf16.msrb.mxu0 %v2069_v29  ;;  %1225 = vmatpush.bf16.msrb.mxu1 %v2071_v30 }
 0x2ff   :  { %1238 = vmatpush.bf16.msrb.mxu2 %v2117_v45  ;;  %1251 = vmatpush.bf16.msrb.mxu3 %v2092_v37 }
 0x302   :  { %1213 = vmatpush.bf16.msrb.mxu0 %v2094_v38  ;;  %1226 = vmatpush.bf16.msrb.mxu1 %v2104_v41 }
 0x303   :  { %1239 = vmatpush.bf16.msrb.mxu2 %v2151_v56  ;;  %1252 = vmatpush.bf16.msrb.mxu3 %v2134_v50 }
 0x306   :  { %1214 = vmatpush.bf16.msrb.mxu0 %v2136_v51  ;;  %1227 = vmatpush.bf16.msrb.mxu1 %v2149_v55 }
 0x307   :  { %1240 = vmatpush.bf16.msrb.mxu2 %v2187_v4  ;;  %1253 = vmatpush.bf16.msrb.mxu3 %v2173_v63 }
 0x30a   :  { %1215 = vmatpush.bf16.msrb.mxu0 %v2175_v0  ;;  %1228 = vmatpush.bf16.msrb.mxu1 %v2182_v2 }
 0x30b   :  { %1241 = vmatpush.bf16.msrb.mxu2 %v2238_v21  ;;  %1254 = vmatpush.bf16.msrb.mxu3 %v2212_v12 }
 0x30e   :  { %1216 = vmatpush.bf16.msrb.mxu0 %v2214_v13  ;;  %1229 = vmatpush.bf16.msrb.mxu1 %v2227_v17 }
 0x30f   :  { %1242 = vmatpush.bf16.msrb.mxu2 %v2266_v31  ;;  %1255 = vmatpush.bf16.msrb.mxu3 %v2242_v22 }
 0x312   :  { %1217 = vmatpush.bf16.msrb.mxu0 %v2244_v23  ;;  %1230 = vmatpush.bf16.msrb.mxu1 %v2254_v26 }
 0x313   :  { %1243 = vmatpush.bf16.msrb.mxu2 %v2314_v53  ;;  %1256 = vmatpush.bf16.msrb.mxu3 %v2279_v35 }
 0x316   :  { %1218 = vmatpush.bf16.msrb.mxu0 %v2281_v36  ;;  %1231 = vmatpush.bf16.msrb.mxu1 %v2293_v43 }
 0x317   :  { %1244 = vmatpush.bf16.msrb.mxu2 %v2338_v1  ;;  %1257 = vmatpush.bf16.msrb.mxu3 %v2318_v54 }
 0x31a   :  { %1219 = vmatpush.bf16.msrb.mxu0 %v2320_v57  ;;  %1232 = vmatpush.bf16.msrb.mxu1 %v2329_v60 }
 0x31b   :  { %1245 = vmatpush.bf16.msrb.mxu2 %v2357_v8  ;;  %1258 = vmatpush.bf16.msrb.mxu3 %v2348_v6 }
 0x379   :  { %v973_v28 = vpop.f32.mrf.mxu0  ;;  %v986_v47 = vpop.f32.mrf.mxu1 }
 0x37a   :  { %v1016_v58 = vadd.f32 %v973_v28, %v2870_v15  ;;  %v1017_v24 = vadd.f32 %v986_v47, %v2871_v32 }
 0x37c   :  { %v1756_v20 = vmul.f32 -1.442695, %v1016_v58  ;;  %v1757_v16 = vmul.f32 -1.442695, %v1017_v24 }
 0x37e   :  { %1879 = vpow2.f32 %v1756_v20 }
 0x37f   :  { %1881 = vpow2.f32 %v1757_v16 }
 0x380   :  { %v999_v5 = vpop.f32.mrf.mxu2  ;;  %v1012_v3 = vpop.f32.mrf.mxu3 }
 0x381   :  { %v1019_v39 = vadd.f32 %v1012_v3, %v2872_v42  ;;  %v975_v27 = vpop.f32.mrf.mxu0  ;;  %v988_v33 = vpop.f32.mrf.mxu1  ;;  %v1018_v59 = vadd.f32 %v999_v5, %v2873_v40 }
 0x383   :  { %v1758_v7 = vmul.f32 -1.442695, %v1019_v39 }
 0x384   :  { %v1880_v9 = vpop.eup %1879 }
 0x385   :  { %v1882_v11 = vpop.eup %1881  ;;  %v1023_v14 = vadd.f32 1.0, %v1880_v9  ;;  %1883 = vpow2.f32 %v1758_v7 }
 0x386   :  { %v1042_v48 = vadd.f32 1.0, %v1882_v11 }
 0x387   :  { %1885 = vrcp.f32 %v1023_v14  ;;  %v1035_v28 = vand.u32 2147483648, %v1023_v14  ;;  %v1033_v58 = vand.u32 2147483647, %v1023_v14  ;;  %vm1029_vm3 = vweird.f32 %v1023_v14 }
 0x388   :  { %1887 = vrcp.f32 %v1042_v48  ;;  %v1001_v19 = vpop.f32.mrf.mxu2  ;;  %v1014_v49 = vpop.f32.mrf.mxu3  ;;  %v1054_v47 = vand.u32 2147483648, %v1042_v48  ;;  %v1052_v24 = vand.u32 2147483647, %v1042_v48  ;;  %vm1048_vm4 = vweird.f32 %v1042_v48 }
 0x389   :  { %v1036_v5 = vor.u32 1.1754944e-38, %v1035_v28  ;;  %vm1034_vm7 = vcmp.eq.f32.partialorder %v1033_v58, 8.507059e+37 }
 0x38a   :  { %v1055_v39 = vor.u32 1.1754944e-38, %v1054_v47  ;;  %vm1053_vm8 = vcmp.eq.f32.partialorder %v1052_v24, 8.507059e+37 }
 0x38b   :  { %v1884_v44 = vpop.eup %1883 }
 0x38c   :  { %v1062_v46 = vadd.f32 1.0, %v1884_v44 }
 0x38d   :  { %v1886_v18 = vpop.eup %1885 }
 0x38e   :  { %v1888_v52 = vpop.eup %1887  ;;  %v1025_v61 = vmul.f32 %v1886_v18, %v1023_v14  ;;  %1889 = vrcp.f32 %v1062_v46  ;;  %vm1030_vm1 = vweird.f32 %v1886_v18  ;;  %vm1068_vm10 = vweird.f32 %v1062_v46 }
 0x38f   :  { %v1044_v34 = vmul.f32 %v1888_v52, %v1042_v48  ;;  %1891 = vtanh.f32 %v1018_v59  ;;  %vm1049_vm2 = vweird.f32 %v1888_v52  ;;  %vm1031_vm5 = vmor %vm1029_vm3, %vm1030_vm1  ;;  %v1074_v59 = vand.u32 2147483648, %v1062_v46 }
 0x390   :  { %v1026_v62 = vsub.f32 1.0, %v1025_v61  ;;  %vm1050_vm6 = vmor %vm1048_vm4, %vm1049_vm2 }
 0x391   :  { %v1045_v10 = vsub.f32 1.0, %v1044_v34  ;;  %v1075_v34 = vor.u32 1.1754944e-38, %v1074_v59 }
 0x392   :  { %v1027_v15 = vmul.f32 %v1886_v18, %v1026_v62 }
 0x393   :  { %v1046_v32 = vmul.f32 %v1888_v52, %v1045_v10 }
 0x394   :  { %v1890_v20 = vpop.eup %1889  ;;  %v1028_v16 = vadd.f32 %v1886_v18, %v1027_v15 }
 0x395   :  { %v1047_v3 = vadd.f32 %v1888_v52, %v1046_v32  ;;  %v1064_v42 = vmul.f32 %v1890_v20, %v1062_v46  ;;  %v1892_v33 = vpop.eup %1891  ;;  %vm1069_vm9 = vweird.f32 %v1890_v20 }
 0x396   :  { %v1032_v27 = vsel %vm1031_vm5, %v1886_v18, %v1028_v16  ;;  %v1072_v18 = vand.u32 2147483647, %v1062_v46  ;;  %vm1070_vm11 = vmor %vm1068_vm10, %vm1069_vm9 }
 0x397   :  { %v1037_v7 = vsel %vm1034_vm7, %v1036_v5, %v1032_v27  ;;  %v1051_v9 = vsel %vm1050_vm6, %v1888_v52, %v1047_v3  ;;  %v1065_v11 = vsub.f32 1.0, %v1064_v42 }
 0x398   :  { %v1056_v19 = vsel %vm1053_vm8, %v1055_v39, %v1051_v9  ;;  %v1079_v49 = vmul.f32 %v1892_v33, %v1037_v7  ;;  %vm1073_vm12 = vcmp.eq.f32.partialorder %v1072_v18, 8.507059e+37 }
 0x399   :  { %v1078_v44 = vmul.f32 %v1056_v19, %v2639_v25  ;;  %v1066_v40 = vmul.f32 %v1890_v20, %v1065_v11 }
 0x39b   :  { %v2679_v14 = vadd.f32 %v1079_v49, %v1078_v44  ;;  %v1067_v48 = vadd.f32 %v1890_v20, %v1066_v40 }
 0x39d   :  { %1893 = vtanh.f32 %v2679_v14  ;;  %v1071_v61 = vsel %vm1070_vm11, %v1890_v20, %v1067_v48 }
 0x39e   :  { %v1076_v62 = vsel %vm1073_vm12, %v1075_v34, %v1071_v61 }
 0x3a3   :  { %v1894_v52 = vpop.eup %1893 }
 0x3a4   :  { %v1082_v10 = vmul.f32 %v1894_v52, %v1076_v62 }
 0x3a6   :  { %v1087_v28 = vpack.c.bf16 %v1082_v10, %v1082_v10 }
 0x3a8   :  { %1096 = vmatmul.bf16.vlgmr.msra.gmra.mxu0 %v1087_v28  ;;  %1109 = vmatmul.bf16.vlgmr.msra.gmra.mxu1 %v1087_v28 }
 0x3a9   :  { %1122 = vmatmul.bf16.vlgmr.msra.gmra.mxu2 %v1087_v28  ;;  %1135 = vmatmul.bf16.vlgmr.msra.gmra.mxu3 %v1087_v28 }
 0x3aa   :  { %1336 = vmatpush.bf16.msra.mxu0 %v2069_v29  ;;  %1349 = vmatpush.bf16.msra.mxu1 %v2071_v30 }
 0x3ab   :  { %1362 = vmatpush.bf16.msra.mxu2 %v2117_v45  ;;  %1375 = vmatpush.bf16.msra.mxu3 %v2092_v37  ;;  %v2874_v37 = vld [vmem:[#allocation15_spill] sm:$0xff] }
 0x3ae   :  { %1337 = vmatpush.bf16.msra.mxu0 %v2094_v38  ;;  %1350 = vmatpush.bf16.msra.mxu1 %v2104_v41  ;;  %v2875_v41 = vld [vmem:[#allocation16_spill] sm:$0xff] }
 0x3af   :  { %1363 = vmatpush.bf16.msra.mxu2 %v2151_v56  ;;  %1376 = vmatpush.bf16.msra.mxu3 %v2134_v50 }
 0x3b2   :  { %1338 = vmatpush.bf16.msra.mxu0 %v2136_v51  ;;  %1351 = vmatpush.bf16.msra.mxu1 %v2149_v55 }
 0x3b3   :  { %1364 = vmatpush.bf16.msra.mxu2 %v2187_v4  ;;  %1377 = vmatpush.bf16.msra.mxu3 %v2173_v63  ;;  %v2876_v63 = vld [vmem:[#allocation18_spill] sm:$0xff] }
 0x3b6   :  { %1339 = vmatpush.bf16.msra.mxu0 %v2175_v0  ;;  %1352 = vmatpush.bf16.msra.mxu1 %v2182_v2 }
 0x3b7   :  { %1365 = vmatpush.bf16.msra.mxu2 %v2238_v21  ;;  %1378 = vmatpush.bf16.msra.mxu3 %v2212_v12 }
 0x3ba   :  { %1340 = vmatpush.bf16.msra.mxu0 %v2214_v13  ;;  %1353 = vmatpush.bf16.msra.mxu1 %v2227_v17 }
 0x3bb   :  { %1366 = vmatpush.bf16.msra.mxu2 %v2266_v31  ;;  %1379 = vmatpush.bf16.msra.mxu3 %v2242_v22 }
 0x3be   :  { %1341 = vmatpush.bf16.msra.mxu0 %v2244_v23  ;;  %1354 = vmatpush.bf16.msra.mxu1 %v2254_v26 }
 0x3bf   :  { %1367 = vmatpush.bf16.msra.mxu2 %v2314_v53  ;;  %1380 = vmatpush.bf16.msra.mxu3 %v2279_v35 }
 0x3c2   :  { %1342 = vmatpush.bf16.msra.mxu0 %v2281_v36  ;;  %1355 = vmatpush.bf16.msra.mxu1 %v2293_v43  ;;  %v2877_v43 = vld [vmem:[#allocation17_spill] sm:$0xff] }
 0x3c3   :  { %1368 = vmatpush.bf16.msra.mxu2 %v2338_v1  ;;  %1381 = vmatpush.bf16.msra.mxu3 %v2318_v54 }
 0x3c6   :  { %1343 = vmatpush.bf16.msra.mxu0 %v2320_v57  ;;  %1356 = vmatpush.bf16.msra.mxu1 %v2329_v60 }
 0x3c7   :  { %1369 = vmatpush.bf16.msra.mxu2 %v2357_v8  ;;  %1382 = vmatpush.bf16.msra.mxu3 %v2348_v6 }
 0x425   :  { %v1097_v29 = vpop.f32.mrf.mxu0  ;;  %v1110_v30 = vpop.f32.mrf.mxu1 }
 0x426   :  { %v1140_v38 = vadd.f32 %v1097_v29, %v2874_v37  ;;  %v1141_v45 = vadd.f32 %v1110_v30, %v2875_v41  ;;  %v2878_v29 = vld [vmem:[#allocation19_spill] sm:$0xff]  ;;  %v2879_v37 = vld [vmem:[#allocation20_spill] sm:$0xff] }
 0x428   :  { %v1759_v50 = vmul.f32 -1.442695, %v1140_v38  ;;  %v1760_v51 = vmul.f32 -1.442695, %v1141_v45 }
 0x42a   :  { %1895 = vpow2.f32 %v1759_v50 }
 0x42b   :  { %1897 = vpow2.f32 %v1760_v51 }
 0x42c   :  { %v1123_v55 = vpop.f32.mrf.mxu2  ;;  %v1136_v56 = vpop.f32.mrf.mxu3 }
 0x42d   :  { %v1143_v0 = vadd.f32 %v1136_v56, %v2876_v63  ;;  %v1099_v2 = vpop.f32.mrf.mxu0  ;;  %v1112_v4 = vpop.f32.mrf.mxu1  ;;  %v1142_v53 = vadd.f32 %v1123_v55, %v2877_v43  ;;  %v2880_v55 = vld [vmem:[#allocation22_spill] sm:$0xff] }
 0x42f   :  { %v1761_v12 = vmul.f32 -1.442695, %v1143_v0 }
 0x430   :  { %v1896_v13 = vpop.eup %1895 }
 0x431   :  { %v1898_v17 = vpop.eup %1897  ;;  %v1147_v21 = vadd.f32 1.0, %v1896_v13  ;;  %1899 = vpow2.f32 %v1761_v12 }
 0x432   :  { %v1166_v22 = vadd.f32 1.0, %v1898_v17 }
 0x433   :  { %1901 = vrcp.f32 %v1147_v21  ;;  %v1159_v8 = vand.u32 2147483648, %v1147_v21  ;;  %v1157_v47 = vand.u32 2147483647, %v1147_v21  ;;  %vm1153_vm15 = vweird.f32 %v1147_v21 }
 0x434   :  { %1903 = vrcp.f32 %v1166_v22  ;;  %v1125_v23 = vpop.f32.mrf.mxu2  ;;  %v1138_v26 = vpop.f32.mrf.mxu3  ;;  %v1178_v25 = vand.u32 2147483648, %v1166_v22  ;;  %v1176_v58 = vand.u32 2147483647, %v1166_v22  ;;  %vm1172_vm0 = vweird.f32 %v1166_v22 }
 0x435   :  { %v1160_v20 = vor.u32 1.1754944e-38, %v1159_v8  ;;  %vm1158_vm3 = vcmp.eq.f32.partialorder %v1157_v47, 8.507059e+37 }
 0x436   :  { %v1179_v3 = vor.u32 1.1754944e-38, %v1178_v25  ;;  %vm1177_vm4 = vcmp.eq.f32.partialorder %v1176_v58, 8.507059e+37 }
 0x437   :  { %v1900_v31 = vpop.eup %1899 }
 0x438   :  { %v1186_v35 = vadd.f32 1.0, %v1900_v31 }
 0x439   :  { %v1902_v36 = vpop.eup %1901 }
 0x43a   :  { %v1904_v54 = vpop.eup %1903  ;;  %v1149_v57 = vmul.f32 %v1902_v36, %v1147_v21  ;;  %1905 = vrcp.f32 %v1186_v35  ;;  %vm1154_vm13 = vweird.f32 %v1902_v36  ;;  %v1198_v48 = vand.u32 2147483648, %v1186_v35 }
 0x43b   :  { %v1168_v60 = vmul.f32 %v1904_v54, %v1166_v22  ;;  %1907 = vtanh.f32 %v1142_v53  ;;  %vm1173_vm14 = vweird.f32 %v1904_v54  ;;  %vm1155_vm1 = vmor %vm1153_vm15, %vm1154_vm13  ;;  %vm1192_vm6 = vweird.f32 %v1186_v35 }
 0x43c   :  { %v1150_v1 = vsub.f32 1.0, %v1149_v57  ;;  %vm1174_vm2 = vmor %vm1172_vm0, %vm1173_vm14  ;;  %v1196_v59 = vand.u32 2147483647, %v1186_v35  ;;  %v1199_v61 = vor.u32 1.1754944e-38, %v1198_v48 }
 0x43d   :  { %v1169_v6 = vsub.f32 1.0, %v1168_v60 }
 0x43e   :  { %v1151_v46 = vmul.f32 %v1902_v36, %v1150_v1  ;;  %vm1197_vm8 = vcmp.eq.f32.partialorder %v1196_v59, 8.507059e+37 }
 0x43f   :  { %v1170_v15 = vmul.f32 %v1904_v54, %v1169_v6 }
 0x440   :  { %v1906_v32 = vpop.eup %1905  ;;  %v1152_v24 = vadd.f32 %v1902_v36, %v1151_v46 }
 0x441   :  { %v1171_v16 = vadd.f32 %v1904_v54, %v1170_v15  ;;  %v1188_v5 = vmul.f32 %v1906_v32, %v1186_v35  ;;  %v1908_v39 = vpop.eup %1907  ;;  %vm1193_vm5 = vweird.f32 %v1906_v32  ;;  %v2881_v35 = vld [vmem:[#allocation21_spill] sm:$0xff] }
 0x442   :  { %v1156_v42 = vsel %vm1155_vm1, %v1902_v36, %v1152_v24  ;;  %vm1194_vm7 = vmor %vm1192_vm6, %vm1193_vm5 }
 0x443   :  { %v1161_v27 = vsel %vm1158_vm3, %v1160_v20, %v1156_v42  ;;  %v1175_v33 = vsel %vm1174_vm2, %v1904_v54, %v1171_v16  ;;  %v1189_v7 = vsub.f32 1.0, %v1188_v5 }
 0x444   :  { %v1180_v9 = vsel %vm1177_vm4, %v1179_v3, %v1175_v33  ;;  %v1203_v11 = vmul.f32 %v1908_v39, %v1161_v27 }
 0x445   :  { %v1202_v19 = vmul.f32 %v1180_v9, %v2679_v14  ;;  %v1190_v49 = vmul.f32 %v1906_v32, %v1189_v7 }
 0x447   :  { %v2719_v44 = vadd.f32 %v1203_v11, %v1202_v19  ;;  %v1191_v40 = vadd.f32 %v1906_v32, %v1190_v49 }
 0x449   :  { %1909 = vtanh.f32 %v2719_v44  ;;  %v1195_v18 = vsel %vm1194_vm7, %v1906_v32, %v1191_v40 }
 0x44a   :  { %v1200_v52 = vsel %vm1197_vm8, %v1199_v61, %v1195_v18 }
 0x44f   :  { %v1910_v34 = vpop.eup %1909 }
 0x450   :  { %v1206_v62 = vmul.f32 %v1910_v34, %v1200_v52 }
 0x452   :  { %v1211_v10 = vpack.c.bf16 %v1206_v62, %v1206_v62 }
 0x454   :  { %1220 = vmatmul.bf16.vlgmr.msrb.gmra.mxu0 %v1211_v10  ;;  %1233 = vmatmul.bf16.vlgmr.msrb.gmra.mxu1 %v1211_v10 }
 0x455   :  { %1246 = vmatmul.bf16.vlgmr.msrb.gmra.mxu2 %v1211_v10  ;;  %1259 = vmatmul.bf16.vlgmr.msrb.gmra.mxu3 %v1211_v10  ;;  %v1472_v10 = vld [vmem:[%s2841_s4 + $0x70] sm:$0xff] }
 0x4d1   :  { %v1221_v14 = vpop.f32.mrf.mxu0  ;;  %v1234_v28 = vpop.f32.mrf.mxu1 }
 0x4d2   :  { %v1264_v30 = vadd.f32 %v1221_v14, %v2878_v29  ;;  %v1265_v38 = vadd.f32 %v1234_v28, %v2879_v37  ;;  %v1489_v14 = vld [vmem:[%s2841_s4 + $0xf8] sm:$0xff]  ;;  %v1471_v28 = vld [vmem:[%s2841_s4 + $0x68] sm:$0xff]  ;;  %v1488_v29 = vld [vmem:[%s2841_s4 + $0xf0] sm:$0xff] }
 0x4d3   :  { %1514 = vmatpush.msrb.mxu1 %v1489_v14  ;;  %v1487_v37 = vld [vmem:[%s2841_s4 + $0xe8] sm:$0xff] }
 0x4d4   :  { %v1762_v41 = vmul.f32 -1.442695, %v1264_v30  ;;  %v1763_v45 = vmul.f32 -1.442695, %v1265_v38  ;;  %v1470_v30 = vld [vmem:[%s2841_s4 + $0x60] sm:$0xff]  ;;  %v1469_v38 = vld [vmem:[%s2841_s4 + $0x58] sm:$0xff] }
 0x4d5   :  { %1515 = vmatpush.msrb.mxu1 %v1488_v29 }
 0x4d6   :  { %1911 = vpow2.f32 %v1762_v41  ;;  %v1486_v41 = vld [vmem:[%s2841_s4 + $0xe0] sm:$0xff] }
 0x4d7   :  { %1913 = vpow2.f32 %v1763_v45  ;;  %1516 = vmatpush.msrb.mxu1 %v1487_v37  ;;  %v1468_v45 = vld [vmem:[%s2841_s4 + $0x50] sm:$0xff] }
 0x4d8   :  { %v1247_v50 = vpop.f32.mrf.mxu2  ;;  %v1260_v51 = vpop.f32.mrf.mxu3 }
 0x4d9   :  { %v1267_v56 = vadd.f32 %v1260_v51, %v2880_v55  ;;  %v1223_v63 = vpop.f32.mrf.mxu0  ;;  %v1236_v0 = vpop.f32.mrf.mxu1  ;;  %v1266_v36 = vadd.f32 %v1247_v50, %v2881_v35  ;;  %1517 = vmatpush.msrb.mxu1 %v1486_v41  ;;  %v1485_v50 = vld [vmem:[%s2841_s4 + $0xd8] sm:$0xff]  ;;  %v1467_v51 = vld [vmem:[%s2841_s4 + $0x48] sm:$0xff]  ;;  %v1484_v55 = vld [vmem:[%s2841_s4 + $0xd0] sm:$0xff] }
 0x4da   :  { %v1483_v63 = vld [vmem:[%s2841_s4 + $0xc8] sm:$0xff]  ;;  %v1465_v0 = vld [vmem:[%s2841_s4 + $0x38] sm:$0xff]  ;;  %v1480_v35 = vld [vmem:[%s2841_s4 + $0xb0] sm:$0xff] }
 0x4db   :  { %v1764_v2 = vmul.f32 -1.442695, %v1267_v56  ;;  %1518 = vmatpush.msrb.mxu1 %v1485_v50  ;;  %v1466_v56 = vld [vmem:[%s2841_s4 + $0x40] sm:$0xff] }
 0x4dc   :  { %v1912_v4 = vpop.eup %1911 }
 0x4dd   :  { %v1914_v12 = vpop.eup %1913  ;;  %v1271_v13 = vadd.f32 1.0, %v1912_v4  ;;  %1915 = vpow2.f32 %v1764_v2  ;;  %1519 = vmatpush.msrb.mxu1 %v1484_v55  ;;  %v1482_v2 = vld [vmem:[%s2841_s4 + $0xc0] sm:$0xff] }
 0x4de   :  { %v1290_v17 = vadd.f32 1.0, %v1914_v12 }
 0x4df   :  { %1917 = vrcp.f32 %v1271_v13  ;;  %v1283_v1 = vand.u32 2147483648, %v1271_v13  ;;  %v1281_v25 = vand.u32 2147483647, %v1271_v13  ;;  %vm1277_vm11 = vweird.f32 %v1271_v13  ;;  %1520 = vmatpush.msrb.mxu1 %v1483_v63 }
 0x4e0   :  { %1919 = vrcp.f32 %v1290_v17  ;;  %v1249_v21 = vpop.f32.mrf.mxu2  ;;  %v1262_v22 = vpop.f32.mrf.mxu3  ;;  %v1302_v6 = vand.u32 2147483648, %v1290_v17  ;;  %v1300_v47 = vand.u32 2147483647, %v1290_v17  ;;  %vm1296_vm12 = vweird.f32 %v1290_v17 }
 0x4e1   :  { %v1284_v32 = vor.u32 1.1754944e-38, %v1283_v1  ;;  %vm1282_vm15 = vcmp.eq.f32.partialorder %v1281_v25, 8.507059e+37  ;;  %1521 = vmatpush.msrb.mxu1 %v1482_v2  ;;  %v2882_v21 = vld [vmem:[#allocation23_spill] sm:$0xff] }
 0x4e2   :  { %v1303_v16 = vor.u32 1.1754944e-38, %v1302_v6  ;;  %vm1301_vm0 = vcmp.eq.f32.partialorder %v1300_v47, 8.507059e+37  ;;  %v1460_v1 = vld [vmem:[%s2841_s4 + $0x10] sm:$0xff]  ;;  %v1477_v6 = vld [vmem:[%s2841_s4 + $0x98] sm:$0xff] }
 0x4e3   :  { %v1916_v23 = vpop.eup %1915 }
 0x4e4   :  { %v1310_v26 = vadd.f32 1.0, %v1916_v23  ;;  %v2883_v23 = vld [vmem:[#allocation24_spill] sm:$0xff] }
 0x4e5   :  { %v1918_v31 = vpop.eup %1917 }
 0x4e6   :  { %v1920_v43 = vpop.eup %1919  ;;  %v1273_v53 = vmul.f32 %v1918_v31, %v1271_v13  ;;  %1921 = vrcp.f32 %v1310_v26  ;;  %vm1278_vm9 = vweird.f32 %v1918_v31  ;;  %v1322_v40 = vand.u32 2147483648, %v1310_v26  ;;  %v1464_v13 = vld [vmem:[%s2841_s4 + $0x30] sm:$0xff] }
 0x4e7   :  { %v1292_v54 = vmul.f32 %v1920_v43, %v1290_v17  ;;  %1923 = vtanh.f32 %v1266_v36  ;;  %vm1297_vm10 = vweird.f32 %v1920_v43  ;;  %vm1279_vm13 = vmor %vm1277_vm11, %vm1278_vm9  ;;  %vm1316_vm2 = vweird.f32 %v1310_v26  ;;  %v1481_v17 = vld [vmem:[%s2841_s4 + $0xb8] sm:$0xff] }
 0x4e8   :  { %v1274_v57 = vsub.f32 1.0, %v1273_v53  ;;  %vm1298_vm14 = vmor %vm1296_vm12, %vm1297_vm10  ;;  %v1320_v48 = vand.u32 2147483647, %v1310_v26  ;;  %v1323_v18 = vor.u32 1.1754944e-38, %v1322_v40  ;;  %1522 = vmatpush.msrb.mxu1 %v1481_v17  ;;  %v1462_v53 = vld [vmem:[%s2841_s4 + $0x20] sm:$0xff] }
 0x4e9   :  { %v1293_v60 = vsub.f32 1.0, %v1292_v54  ;;  %v1479_v54 = vld [vmem:[%s2841_s4 + $0xa8] sm:$0xff] }
 0x4ea   :  { %v1275_v8 = vmul.f32 %v1918_v31, %v1274_v57  ;;  %vm1321_vm4 = vcmp.eq.f32.partialorder %v1320_v48, 8.507059e+37  ;;  %1523 = vmatpush.msrb.mxu1 %v1480_v35  ;;  %v1461_v57 = vld [vmem:[%s2841_s4 + $0x18] sm:$0xff] }
 0x4eb   :  { %v1294_v46 = vmul.f32 %v1920_v43, %v1293_v60  ;;  %v1478_v60 = vld [vmem:[%s2841_s4 + $0xa0] sm:$0xff] }
 0x4ec   :  { %v1922_v15 = vpop.eup %1921  ;;  %v1276_v58 = vadd.f32 %v1918_v31, %v1275_v8  ;;  %1524 = vmatpush.msrb.mxu1 %v1479_v54  ;;  %v2885_v48 = vld [vmem:[#allocation25_spill] sm:$0xff] }
 0x4ed   :  { %v1295_v24 = vadd.f32 %v1920_v43, %v1294_v46  ;;  %v1312_v20 = vmul.f32 %v1922_v15, %v1310_v26  ;;  %v1924_v3 = vpop.eup %1923  ;;  %vm1317_vm1 = vweird.f32 %v1922_v15  ;;  %v2884_v46 = vld [vmem:[#allocation26_spill] sm:$0xff] }
 0x4ee   :  { %v1280_v5 = vsel %vm1279_vm13, %v1918_v31, %v1276_v58  ;;  %vm1318_vm3 = vmor %vm1316_vm2, %vm1317_vm1  ;;  %v1463_v31 = vld [vmem:[%s2841_s4 + $0x28] sm:$0xff]  ;;  %1525 = vmatpush.msrb.mxu1 %v1478_v60  ;;  %vm1534_vm1 = vcmask 9216  }
 0x4ef   :  { %v1285_v42 = vsel %vm1282_vm15, %v1284_v32, %v1280_v5  ;;  %v1299_v39 = vsel %vm1298_vm14, %v1920_v43, %v1295_v24  ;;  %v1313_v27 = vsub.f32 1.0, %v1312_v20  ;;  %v1459_v32 = vld [vmem:[%s2841_s4 + $0x8] sm:$0xff]  ;;  %v1476_v24 = vld [vmem:[%s2841_s4 + $0x90] sm:$0xff] }
 0x4f0   :  { %v1304_v33 = vsel %vm1301_vm0, %v1303_v16, %v1299_v39  ;;  %v1327_v7 = vmul.f32 %v1924_v3, %v1285_v42  ;;  %1526 = vmatpush.msrb.mxu1 %v1477_v6  ;;  %v1458_v16 = vld [vmem:[%s2841_s4] sm:$0xff]  ;;  %v1475_v5 = vld [vmem:[%s2841_s4 + $0x88] sm:$0xff] }
 0x4f1   :  { %v1326_v9 = vmul.f32 %v1304_v33, %v2719_v44  ;;  %v1314_v11 = vmul.f32 %v1922_v15, %v1313_v27  ;;  %v1473_v44 = vld [vmem:[%s2841_s4 + $0x78] sm:$0xff]  ;;  %v1474_v33 = vld [vmem:[%s2841_s4 + $0x80] sm:$0xff] }
 0x4f2   :  { %1494 = vmatpush.msrb.mxu0 %v1473_v44  ;;  %1527 = vmatpush.msrb.mxu1 %v1476_v24 }
 0x4f3   :  { %v2727_v19 = vadd.f32 %v1327_v7, %v1326_v9  ;;  %v1315_v49 = vadd.f32 %v1922_v15, %v1314_v11 }
 0x4f4   :  { %1495 = vmatpush.msrb.mxu0 %v1472_v10  ;;  %1528 = vmatpush.msrb.mxu1 %v1475_v5 }
 0x4f5   :  { %1925 = vtanh.f32 %v2727_v19  ;;  %v1319_v59 = vsel %vm1318_vm3, %v1922_v15, %v1315_v49 }
 0x4f6   :  { %v1324_v34 = vsel %vm1321_vm4, %v1323_v18, %v1319_v59  ;;  %1496 = vmatpush.msrb.mxu0 %v1471_v28  ;;  %1529 = vmatpush.msrb.mxu1 %v1474_v33 }
 0x4f8   :  { %1497 = vmatpush.msrb.mxu0 %v1470_v30 }
 0x4fa   :  { %1498 = vmatpush.msrb.mxu0 %v1469_v38 }
 0x4fb   :  { %v1926_v61 = vpop.eup %1925 }
 0x4fc   :  { %v1330_v52 = vmul.f32 %v1926_v61, %v1324_v34  ;;  %1499 = vmatpush.msrb.mxu0 %v1468_v45 }
 0x4fe   :  { %v1335_v62 = vpack.c.bf16 %v1330_v52, %v1330_v52  ;;  %1500 = vmatpush.msrb.mxu0 %v1467_v51 }
 0x500   :  { %1344 = vmatmul.bf16.vlgmr.msra.gmra.mxu0 %v1335_v62  ;;  %1357 = vmatmul.bf16.vlgmr.msra.gmra.mxu1 %v1335_v62 }
 0x501   :  { %1370 = vmatmul.bf16.vlgmr.msra.gmra.mxu2 %v1335_v62  ;;  %1383 = vmatmul.bf16.vlgmr.msra.gmra.mxu3 %v1335_v62 }
 0x502   :  { %1501 = vmatpush.msrb.mxu0 %v1466_v56 }
 0x504   :  { %1502 = vmatpush.msrb.mxu0 %v1465_v0 }
 0x506   :  { %1503 = vmatpush.msrb.mxu0 %v1464_v13 }
 0x508   :  { %1504 = vmatpush.msrb.mxu0 %v1463_v31 }
 0x50a   :  { %1505 = vmatpush.msrb.mxu0 %v1462_v53 }
 0x50c   :  { %1506 = vmatpush.msrb.mxu0 %v1461_v57 }
 0x50e   :  { %1507 = vmatpush.msrb.mxu0 %v1460_v1 }
 0x510   :  { %1508 = vmatpush.msrb.mxu0 %v1459_v32 }
 0x512   :  { %1509 = vmatpush.msrb.mxu0 %v1458_v16 }
 0x57d   :  { %v1345_v4 = vpop.f32.mrf.mxu0  ;;  %v1358_v12 = vpop.f32.mrf.mxu1 }
 0x57e   :  { %v1388_v22 = vadd.f32 %v1345_v4, %v2882_v21  ;;  %v1389_v26 = vadd.f32 %v1358_v12, %v2883_v23 }
 0x580   :  { %v1765_v36 = vmul.f32 -1.442695, %v1388_v22  ;;  %v1766_v43 = vmul.f32 -1.442695, %v1389_v26 }
 0x582   :  { %1927 = vpow2.f32 %v1765_v36 }
 0x583   :  { %1929 = vpow2.f32 %v1766_v43 }
 0x584   :  { %v1371_v8 = vpop.f32.mrf.mxu2  ;;  %v1384_v25 = vpop.f32.mrf.mxu3 }
 0x585   :  { %v1391_v47 = vadd.f32 %v1384_v25, %v2884_v46  ;;  %v1347_v15 = vpop.f32.mrf.mxu0  ;;  %v1360_v58 = vpop.f32.mrf.mxu1  ;;  %v1390_v59 = vadd.f32 %v1371_v8, %v2885_v48 }
 0x587   :  { %v1767_v20 = vmul.f32 -1.442695, %v1391_v47 }
 0x588   :  { %v1928_v3 = vpop.eup %1927 }
 0x589   :  { %v1930_v42 = vpop.eup %1929  ;;  %v1395_v39 = vadd.f32 1.0, %v1928_v3  ;;  %1931 = vpow2.f32 %v1767_v20 }
 0x58a   :  { %v1414_v27 = vadd.f32 1.0, %v1930_v42 }
 0x58b   :  { %1933 = vrcp.f32 %v1395_v39  ;;  %v1407_v44 = vand.u32 2147483648, %v1395_v39  ;;  %v1405_v28 = vand.u32 2147483647, %v1395_v39  ;;  %vm1401_vm7 = vweird.f32 %v1395_v39 }
 0x58c   :  { %1935 = vrcp.f32 %v1414_v27  ;;  %v1373_v7 = vpop.f32.mrf.mxu2  ;;  %v1386_v9 = vpop.f32.mrf.mxu3  ;;  %v1426_v10 = vand.u32 2147483648, %v1414_v27  ;;  %v1424_v30 = vand.u32 2147483647, %v1414_v27  ;;  %vm1420_vm8 = vweird.f32 %v1414_v27 }
 0x58d   :  { %v1408_v41 = vor.u32 1.1754944e-38, %v1407_v44  ;;  %vm1406_vm11 = vcmp.eq.f32.partialorder %v1405_v28, 8.507059e+37 }
 0x58e   :  { %v1427_v51 = vor.u32 1.1754944e-38, %v1426_v10  ;;  %vm1425_vm12 = vcmp.eq.f32.partialorder %v1424_v30, 8.507059e+37 }
 0x58f   :  { %v1932_v11 = vpop.eup %1931 }
 0x590   :  { %v1434_v49 = vadd.f32 1.0, %v1932_v11 }
 0x591   :  { %v1934_v40 = vpop.eup %1933 }
 0x592   :  { %v1936_v18 = vpop.eup %1935  ;;  %v1397_v61 = vmul.f32 %v1934_v40, %v1395_v39  ;;  %1937 = vrcp.f32 %v1434_v49  ;;  %vm1402_vm5 = vweird.f32 %v1934_v40  ;;  %v1446_v23 = vand.u32 2147483648, %v1434_v49 }
 0x593   :  { %v1416_v34 = vmul.f32 %v1936_v18, %v1414_v27  ;;  %1939 = vtanh.f32 %v1390_v59  ;;  %vm1421_vm6 = vweird.f32 %v1936_v18  ;;  %vm1403_vm9 = vmor %vm1401_vm7, %vm1402_vm5  ;;  %vm1440_vm14 = vweird.f32 %v1434_v49 }
 0x594   :  { %v1398_v52 = vsub.f32 1.0, %v1397_v61  ;;  %vm1422_vm10 = vmor %vm1420_vm8, %vm1421_vm6  ;;  %v1444_v26 = vand.u32 2147483647, %v1434_v49  ;;  %v1447_v35 = vor.u32 1.1754944e-38, %v1446_v23 }
 0x595   :  { %v1417_v62 = vsub.f32 1.0, %v1416_v34 }
 0x596   :  { %v1399_v14 = vmul.f32 %v1934_v40, %v1398_v52  ;;  %vm1445_vm0 = vcmp.eq.f32.partialorder %v1444_v26, 8.507059e+37 }
 0x597   :  { %v1418_v29 = vmul.f32 %v1936_v18, %v1417_v62 }
 0x598   :  { %v1938_v37 = vpop.eup %1937  ;;  %v1400_v38 = vadd.f32 %v1934_v40, %v1399_v14 }
 0x599   :  { %v1419_v45 = vadd.f32 %v1936_v18, %v1418_v29  ;;  %v1436_v50 = vmul.f32 %v1938_v37, %v1434_v49  ;;  %v1940_v56 = vpop.eup %1939  ;;  %vm1441_vm13 = vweird.f32 %v1938_v37 }
 0x59a   :  { %v1404_v55 = vsel %vm1403_vm9, %v1934_v40, %v1400_v38  ;;  %vm1442_vm15 = vmor %vm1440_vm14, %vm1441_vm13 }
 0x59b   :  { %v1409_v63 = vsel %vm1406_vm11, %v1408_v41, %v1404_v55  ;;  %v1423_v0 = vsel %vm1422_vm10, %v1936_v18, %v1419_v45  ;;  %v1437_v2 = vsub.f32 1.0, %v1436_v50 }
 0x59c   :  { %v1428_v4 = vsel %vm1425_vm12, %v1427_v51, %v1423_v0  ;;  %v1451_v12 = vmul.f32 %v1940_v56, %v1409_v63 }
 0x59d   :  { %v1450_v13 = vmul.f32 %v1428_v4, %v2727_v19  ;;  %v1438_v17 = vmul.f32 %v1938_v37, %v1437_v2  ;;  %v1814_v19 = vld [vmem:[%s2842_s5] ss:$0 sm:$0xff] }
 0x59f   :  { %v1452_v21 = vadd.f32 %v1451_v12, %v1450_v13  ;;  %v1439_v22 = vadd.f32 %v1938_v37, %v1438_v17 }
 0x5a1   :  { %1941 = vtanh.f32 %v1452_v21  ;;  %v1443_v31 = vsel %vm1442_vm15, %v1938_v37, %v1439_v22 }
 0x5a2   :  { %v1448_v43 = vsel %vm1445_vm0, %v1447_v35, %v1443_v31 }
 0x5a7   :  { %v1942_v36 = vpop.eup %1941 }
 0x5a8   :  { %v1454_v53 = vmul.f32 %v1942_v36, %v1448_v43 }
 0x5aa   :  { %1510 = vmatmul.f32.vlgmr.msrb.gmra.mxu0 %v1454_v53  ;;  %v1456_v54 = vrot.slane %v1454_v53, 2 }
 0x5ac   :  { %1530 = vmatmul.f32.vlgmr.msrb.gmra.mxu1 %v1456_v54 }
 0x627   :  { %v1511_v57 = vpop.f32.mrf.mxu0 }
 0x628   :  { %v1512_v60 = vadd.f32 %v1814_v19, %v1511_v57 }
 0x629   :  { %v1531_v1 = vpop.f32.mrf.mxu1 }
 0x62a   :  { %v1532_v6 = vadd.f32 %v1531_v1, %v1512_v60 }
 0x62c   :  { %1535 = vst.msk [vmem:[#allocation3] sm:$0x3] %vm1534_vm1, %v1532_v6 }
 0x62d   :  { %1546 = dma.vmem_to_hbm [thread:$0]  %s1542_s24, 32, %s1544_s27, [#allocation4]  }
 0x62e   :  { %1967 = dma.done.wait [#allocation4], 32  }
 0x62f   :  { %1968 = vsyncadd [#allocation4], 4294967264 }
 0x630   :  { %1551 = vsyncpa [#allocation4], 1 }

</bundles_post_ra>
